<compile_context>
chip_gen: v6e
topology: v6e:2x2x1
jax: 0.10.0
libtpu: 0.0.40
codegen_flags: <defaults>
</compile_context>

<pallas_src>
import functools

import jax
import jax.numpy as jnp
from jax.experimental import pallas as pl
from jax.experimental.pallas import tpu as pltpu


def _resblock_kernel(x_ref, top_ref, bot_ref, w1_ref, b1_ref, w2_ref, b2_ref,
                     o_ref, xp_ref, yp_ref, *, res_scale):
    # x_ref  : (1, TH, W, C)   band of x (also the residual)
    # top_ref: (1, 2,  W, C)   last 2 rows of band b-1 (unused when b == 0)
    # bot_ref: (1, 2,  W, C)   first 2 rows of band b+1 (unused when b == nb-1)
    # w*_ref : (3, 3C, C)      kh-concatenated weight slabs, one per kw
    # b*_ref : (1, C)          biases (f32)
    # o_ref  : (1, TH, W, C)
    # xp_ref : (TH+4, W+2, C)  zero-padded input band scratch
    # yp_ref : (TH+2, W+2, C)  zero-haloed conv1-output scratch
    b = pl.program_id(1)
    nb = pl.num_programs(1)
    TH, W, C = o_ref.shape[1], o_ref.shape[2], o_ref.shape[3]
    cdt = x_ref.dtype                      # matmul operand dtype (f32 or bf16)

    # ---- zero-padded input band: xp[i, j] = x[r0 - 2 + i, j - 1] -----------
    xp_ref[...] = jnp.zeros(xp_ref.shape, xp_ref.dtype)
    xp_ref[2:2 + TH, 1:1 + W, :] = x_ref[0]

    @pl.when(b > 0)
    def _():
        xp_ref[0:2, 1:1 + W, :] = top_ref[0]

    @pl.when(b < nb - 1)
    def _():
        xp_ref[TH + 2:TH + 4, 1:1 + W, :] = bot_ref[0]

    xp = xp_ref[...]

    # ---- conv1 + bias + ReLU: TH+2 output rows (1-row halo for conv2) ------
    # kh-concat slab, built once and shared by the 3 kw shifts: K = 3*C.
    t1 = jnp.concatenate([xp[kh:kh + TH + 2, :, :] for kh in range(3)], axis=-1)
    acc1 = jnp.broadcast_to(b1_ref[...].astype(jnp.float32), ((TH + 2) * W, C))
    for kw in range(3):
        acc1 = acc1 + jnp.dot(
            t1[:, kw:kw + W, :].reshape((TH + 2) * W, 3 * C), w1_ref[kw],
            preferred_element_type=jnp.float32)
    y = jnp.maximum(acc1, 0.0).reshape(TH + 2, W, C).astype(cdt)

    # ---- zero-haloed conv1 output (this is conv2's SAME zero padding) ------
    yp_ref[...] = jnp.zeros(yp_ref.shape, yp_ref.dtype)
    yp_ref[1:1 + TH, 1:1 + W, :] = y[1:1 + TH]

    @pl.when(b > 0)                     # y row r0-1 is a real image row
    def _():
        yp_ref[0:1, 1:1 + W, :] = y[0:1]

    @pl.when(b < nb - 1)                # y row r0+TH is a real image row
    def _():
        yp_ref[TH + 1:TH + 2, 1:1 + W, :] = y[TH + 1:TH + 2]

    yp = yp_ref[...]

    # ---- conv2 + bias, then * res_scale + residual --------------------------
    t2 = jnp.concatenate([yp[kh:kh + TH, :, :] for kh in range(3)], axis=-1)
    acc2 = jnp.broadcast_to(b2_ref[...].astype(jnp.float32), (TH * W, C))
    for kw in range(3):
        acc2 = acc2 + jnp.dot(
            t2[:, kw:kw + W, :].reshape(TH * W, 3 * C), w2_ref[kw],
            preferred_element_type=jnp.float32)
    out = (acc2 * jnp.float32(res_scale)
           + x_ref[0].reshape(TH * W, C).astype(jnp.float32))
    o_ref[...] = out.reshape(1, TH, W, C).astype(o_ref.dtype)


def _pick_block_h(H, W, C, itemsize, budget_bytes=12 * 1024 * 1024):
    """Largest even divisor of H whose per-step VMEM footprint fits the budget."""
    best = None
    for th in range(2, H + 1, 2):
        if H % th:
            continue
        est = itemsize * (2 * 2 * th * W * C            # in + out, double-buffered
                          + 2 * 2 * 2 * W * C           # halo blocks, double-buffered
                          + (th + 4) * (W + 2) * C      # xp scratch
                          + (th + 2) * (W + 2) * C      # yp scratch
                          + 2 * 2 * 9 * C * C)          # weights
        est += 4 * ((th + 2) * (W + 2) * 3 * C          # conv1 kh-slab
                    + th * (W + 2) * 3 * C              # conv2 kh-slab
                    + 2 * (th + 2) * W * C)             # f32 accumulators
        if est <= budget_bytes:
            best = th
    return best if best is not None else 2


def resblock_forward(x_nchw, w1, b1, w2, b2, res_scale=1.0, block_h=None):
    """ResBlock forward.  x_nchw: [N, C, H, W]; w*: [3, 3, Cin, Cout] (HWIO)."""
    N, C, H, W = x_nchw.shape
    if H % 2 != 0:
        # TODO(synk): handle odd H (partial last band) — not needed for EDSR/RCAN sizes.
        raise ValueError("H must be even")
    x = jnp.transpose(x_nchw, (0, 2, 3, 1))                     # NHWC
    itemsize = jnp.dtype(x.dtype).itemsize
    if block_h is None:
        block_h = _pick_block_h(H, W, C, itemsize)
    if H % block_h != 0 or block_h % 2 != 0:
        raise ValueError("block_h must be an even divisor of H")
    TH = int(block_h)
    nb = H // TH
    hb = TH // 2                      # halo block index unit (H-blocks of 2 rows)

    # HWIO (3,3,Cin,Cout) -> (kw, kh*Cin, Cout): kh-concatenated weight slabs.
    w1c = jnp.transpose(w1, (1, 0, 2, 3)).reshape(3, 3 * C, C).astype(x.dtype)
    w2c = jnp.transpose(w2, (1, 0, 2, 3)).reshape(3, 3 * C, C).astype(x.dtype)
    b1r = b1.reshape(1, C).astype(jnp.float32)
    b2r = b2.reshape(1, C).astype(jnp.float32)

    kernel = functools.partial(_resblock_kernel, res_scale=float(res_scale))

    flops = 2 * 2 * 9 * N * H * W * C * C                       # two 3x3 convs
    bytes_accessed = 2 * N * H * W * C * itemsize + 2 * 9 * C * C * itemsize
    cost = pl.CostEstimate(flops=flops, transcendentals=0,
                           bytes_accessed=bytes_accessed)

    out = pl.pallas_call(
        kernel,
        out_shape=jax.ShapeDtypeStruct((N, H, W, C), x.dtype),
        grid_spec=pltpu.PrefetchScalarGridSpec(
            num_scalar_prefetch=0,
            grid=(N, nb),
            in_specs=[
                # main band (conv input interior rows + residual)
                pl.BlockSpec((1, TH, W, C), lambda n, b: (n, b, 0, 0)),
                # top halo: last 2 rows of band b-1
                pl.BlockSpec((1, 2, W, C),
                             lambda n, b: (n, jnp.maximum(b * hb - 1, 0), 0, 0)),
                # bottom halo: first 2 rows of band b+1
                pl.BlockSpec((1, 2, W, C),
                             lambda n, b: (n, jnp.minimum((b + 1) * hb, H // 2 - 1),
                                           0, 0)),
                pl.BlockSpec((3, 3 * C, C), lambda n, b: (0, 0, 0)),
                pl.BlockSpec((1, C), lambda n, b: (0, 0)),
                pl.BlockSpec((3, 3 * C, C), lambda n, b: (0, 0, 0)),
                pl.BlockSpec((1, C), lambda n, b: (0, 0)),
            ],
            out_specs=pl.BlockSpec((1, TH, W, C), lambda n, b: (n, b, 0, 0)),
            scratch_shapes=[
                pltpu.VMEM((TH + 4, W + 2, C), x.dtype),   # zero-padded x band
                pltpu.VMEM((TH + 2, W + 2, C), x.dtype),   # zero-haloed conv1 out
            ],
        ),
        compiler_params=pltpu.CompilerParams(
            dimension_semantics=("parallel", "parallel"),
            vmem_limit_bytes=64 * 1024 * 1024),
        cost_estimate=cost,
    )(x, x, x, w1c, b1r, w2c, b2r)
    return jnp.transpose(out, (0, 3, 1, 2))


def _resblock_reference(x_nchw, w1, b1, w2, b2, res_scale=1.0):
    # Pure-JAX reference (lax conv) for validation.
    dn = jax.lax.conv_dimension_numbers(x_nchw.shape, w1.shape,
                                        ("NCHW", "HWIO", "NCHW"))
    y = jax.lax.conv_general_dilated(x_nchw, w1, (1, 1), "SAME",
                                     dimension_numbers=dn)
    y = jnp.maximum(y + b1.reshape(1, -1, 1, 1), 0.0)
    z = jax.lax.conv_general_dilated(y, w2, (1, 1), "SAME",
                                     dimension_numbers=dn)
    z = z + b2.reshape(1, -1, 1, 1)
    return z * res_scale + x_nchw


if __name__ == "__main__":
    key = jax.random.PRNGKey(0)
    N, C, H, W = 2, 4, 16, 16          # batch=2, n_feat=4, spatial=16
    K = 3

    k_x, k_w1, k_b1, k_w2, k_b2 = jax.random.split(key, 5)
    x = jax.random.normal(k_x, (N, C, H, W), dtype=jnp.float32)
    fan_in = C * K * K
    scale = (2.0 / fan_in) ** 0.5
    w1 = jax.random.normal(k_w1, (K, K, C, C), dtype=jnp.float32) * scale
    b1 = jax.random.normal(k_b1, (C,), dtype=jnp.float32) * 0.01
    w2 = jax.random.normal(k_w2, (K, K, C, C), dtype=jnp.float32) * scale
    b2 = jax.random.normal(k_b2, (C,), dtype=jnp.float32) * 0.01

    # Exercise: 2 bands (halo paths), 4 bands with res_scale != 1, single band.
    for bh, rs in ((8, 1.0), (4, 0.5), (16, 1.0)):
        out = jax.block_until_ready(
            resblock_forward(x, w1, b1, w2, b2, res_scale=rs, block_h=bh))
        ref = _resblock_reference(x, w1, b1, w2, b2, rs)
        assert out.shape == (N, C, H, W)
        assert jnp.allclose(out, ref, atol=1e-4, rtol=1e-4), \
            f"mismatch vs reference (block_h={bh}, res_scale={rs})"

    print("KERNEL_OK")
</pallas_src>

<mosaic_0001>
module attributes {stable_mosaic.version = 11 : i64} {
  func.func @_resblock_kernel(%arg0: i32, %arg1: i32, %arg2: memref<1x8x16x4xf32, #tpu.memory_space<vmem>>, %arg3: memref<1x2x16x4xf32, #tpu.memory_space<vmem>>, %arg4: memref<1x2x16x4xf32, #tpu.memory_space<vmem>>, %arg5: memref<3x12x4xf32, #tpu.memory_space<vmem>>, %arg6: memref<1x4xf32, #tpu.memory_space<vmem>>, %arg7: memref<3x12x4xf32, #tpu.memory_space<vmem>>, %arg8: memref<1x4xf32, #tpu.memory_space<vmem>>, %arg9: memref<1x8x16x4xf32, #tpu.memory_space<vmem>>, %arg10: memref<12x18x4xf32, #tpu.memory_space<vmem>>, %arg11: memref<10x18x4xf32, #tpu.memory_space<vmem>>) attributes {dimension_semantics = [#tpu.dimension_semantics<parallel>, #tpu.dimension_semantics<parallel>], iteration_bounds = array<i64: 2, 2>, scalar_prefetch = 0 : i64, scratch_operands = 2 : i64, tpu.core_type = #tpu.core_type<tc>, window_params = [{transform_indices = @transform_0, window_bounds = array<i64: 1, 8, 16, 4>}, {transform_indices = @transform_1, window_bounds = array<i64: 1, 2, 16, 4>}, {transform_indices = @transform_2, window_bounds = array<i64: 1, 2, 16, 4>}, {pipeline_mode = #tpu.pipeline_mode<synchronous>, transform_indices = @transform_3, window_bounds = array<i64: 3, 12, 4>}, {pipeline_mode = #tpu.pipeline_mode<synchronous>, transform_indices = @transform_4, window_bounds = array<i64: 1, 4>}, {pipeline_mode = #tpu.pipeline_mode<synchronous>, transform_indices = @transform_5, window_bounds = array<i64: 3, 12, 4>}, {pipeline_mode = #tpu.pipeline_mode<synchronous>, transform_indices = @transform_6, window_bounds = array<i64: 1, 4>}, {transform_indices = @transform_7, window_bounds = array<i64: 1, 8, 16, 4>}]} {
    %cst = arith.constant 0.000000e+00 : f32
    %0 = vector.broadcast %cst : f32 to vector<12x18x4xf32>
    %c0 = arith.constant 0 : index
    %c0_0 = arith.constant 0 : index
    %c0_1 = arith.constant 0 : index
    %1 = vector.load %arg10[%c0, %c0_0, %c0_1] : memref<12x18x4xf32, #tpu.memory_space<vmem>>, vector<12x18x4xf32>
    tpu.vector_store %arg10[%c0, %c0_0, %c0_1], %0 {strides = array<i32>} : memref<12x18x4xf32, #tpu.memory_space<vmem>>, vector<12x18x4xf32>,
    %c0_2 = arith.constant 0 : index
    %c0_3 = arith.constant 0 : index
    %c0_4 = arith.constant 0 : index
    %c0_5 = arith.constant 0 : index
    %2 = vector.load %arg2[%c0_2, %c0_3, %c0_4, %c0_5] : memref<1x8x16x4xf32, #tpu.memory_space<vmem>>, vector<1x8x16x4xf32>
    %3 = vector.shape_cast %2 : vector<1x8x16x4xf32> to vector<8x16x4xf32>
    %c2 = arith.constant 2 : index
    %c1 = arith.constant 1 : index
    %c0_6 = arith.constant 0 : index
    %4 = vector.load %arg10[%c2, %c1, %c0_6] : memref<12x18x4xf32, #tpu.memory_space<vmem>>, vector<8x16x4xf32>
    tpu.vector_store %arg10[%c2, %c1, %c0_6], %3 {strides = array<i32>} : memref<12x18x4xf32, #tpu.memory_space<vmem>>, vector<8x16x4xf32>,
    %c0_i32 = arith.constant 0 : i32
    %5 = arith.cmpi sgt, %arg1, %c0_i32 : i32
    %6 = arith.extui %5 : i1 to i32
    %c0_i32_7 = arith.constant 0 : i32
    %7 = arith.cmpi ne, %6, %c0_i32_7 : i32
    scf.if %7 {
      %c0_64 = arith.constant 0 : index
      %c0_65 = arith.constant 0 : index
      %c0_66 = arith.constant 0 : index
      %c0_67 = arith.constant 0 : index
      %84 = vector.load %arg3[%c0_64, %c0_65, %c0_66, %c0_67] : memref<1x2x16x4xf32, #tpu.memory_space<vmem>>, vector<1x2x16x4xf32>
      %85 = vector.shape_cast %84 : vector<1x2x16x4xf32> to vector<2x16x4xf32>
      %c0_68 = arith.constant 0 : index
      %c1_69 = arith.constant 1 : index
      %c0_70 = arith.constant 0 : index
      %86 = vector.load %arg10[%c0_68, %c1_69, %c0_70] : memref<12x18x4xf32, #tpu.memory_space<vmem>>, vector<2x16x4xf32>
      tpu.vector_store %arg10[%c0_68, %c1_69, %c0_70], %85 {strides = array<i32>} : memref<12x18x4xf32, #tpu.memory_space<vmem>>, vector<2x16x4xf32>,
    } else {
    }
    %c1_i32 = arith.constant 1 : i32
    %8 = arith.cmpi slt, %arg1, %c1_i32 : i32
    %9 = arith.extui %8 : i1 to i32
    %c0_i32_8 = arith.constant 0 : i32
    %10 = arith.cmpi ne, %9, %c0_i32_8 : i32
    scf.if %10 {
      %c0_64 = arith.constant 0 : index
      %c0_65 = arith.constant 0 : index
      %c0_66 = arith.constant 0 : index
      %c0_67 = arith.constant 0 : index
      %84 = vector.load %arg4[%c0_64, %c0_65, %c0_66, %c0_67] : memref<1x2x16x4xf32, #tpu.memory_space<vmem>>, vector<1x2x16x4xf32>
      %85 = vector.shape_cast %84 : vector<1x2x16x4xf32> to vector<2x16x4xf32>
      %c10 = arith.constant 10 : index
      %c1_68 = arith.constant 1 : index
      %c0_69 = arith.constant 0 : index
      %86 = vector.load %arg10[%c10, %c1_68, %c0_69] : memref<12x18x4xf32, #tpu.memory_space<vmem>>, vector<2x16x4xf32>
      tpu.vector_store %arg10[%c10, %c1_68, %c0_69], %85 {strides = array<i32>} : memref<12x18x4xf32, #tpu.memory_space<vmem>>, vector<2x16x4xf32>,
    } else {
    }
    %c0_9 = arith.constant 0 : index
    %c0_10 = arith.constant 0 : index
    %c0_11 = arith.constant 0 : index
    %11 = vector.load %arg10[%c0_9, %c0_10, %c0_11] : memref<12x18x4xf32, #tpu.memory_space<vmem>>, vector<12x18x4xf32>
    %12 = vector.extract_strided_slice %11 {offsets = [0, 0, 0], sizes = [10, 18, 4], strides = [1, 1, 1]} : vector<12x18x4xf32> to vector<10x18x4xf32>
    %13 = vector.extract_strided_slice %11 {offsets = [1, 0, 0], sizes = [10, 18, 4], strides = [1, 1, 1]} : vector<12x18x4xf32> to vector<10x18x4xf32>
    %14 = vector.extract_strided_slice %11 {offsets = [2, 0, 0], sizes = [10, 18, 4], strides = [1, 1, 1]} : vector<12x18x4xf32> to vector<10x18x4xf32>
    %15 = tpu.concatenate %12, %13, %14 in 2 : vector<10x18x4xf32>, vector<10x18x4xf32>, vector<10x18x4xf32> -> vector<10x18x12xf32>
    %c0_12 = arith.constant 0 : index
    %c0_13 = arith.constant 0 : index
    %16 = vector.load %arg6[%c0_12, %c0_13] : memref<1x4xf32, #tpu.memory_space<vmem>>, vector<1x4xf32>
    %17 = vector.shape_cast %16 : vector<1x4xf32> to vector<1x4xf32>
    %18 = vector.broadcast %17 : vector<1x4xf32> to vector<160x4xf32>
    %19 = vector.extract_strided_slice %15 {offsets = [0, 0, 0], sizes = [10, 16, 12], strides = [1, 1, 1]} : vector<10x18x12xf32> to vector<10x16x12xf32>
    %20 = vector.shape_cast %19 : vector<10x16x12xf32> to vector<160x12xf32>
    %c0_14 = arith.constant 0 : index
    %c0_15 = arith.constant 0 : index
    %c0_16 = arith.constant 0 : index
    %21 = vector.load %arg5[%c0_14, %c0_15, %c0_16] : memref<3x12x4xf32, #tpu.memory_space<vmem>>, vector<1x12x4xf32>
    %22 = vector.shape_cast %21 : vector<1x12x4xf32> to vector<12x4xf32>
    %cst_17 = arith.constant dense<0.000000e+00> : vector<160x4xf32>
    %23 = tpu.matmul %20, %22, %cst_17 {dimension_numbers = #tpu.dot_dimension_numbers<[1], [0], [0], [1], [0, 0, 1, 1], [], []>} : vector<160x12xf32>, vector<12x4xf32>, vector<160x4xf32> -> vector<160x4xf32>
    %24 = arith.addf %18, %23 : vector<160x4xf32>
    %25 = vector.extract_strided_slice %15 {offsets = [0, 1, 0], sizes = [10, 16, 12], strides = [1, 1, 1]} : vector<10x18x12xf32> to vector<10x16x12xf32>
    %26 = vector.shape_cast %25 : vector<10x16x12xf32> to vector<160x12xf32>
    %c1_18 = arith.constant 1 : index
    %c0_19 = arith.constant 0 : index
    %c0_20 = arith.constant 0 : index
    %27 = vector.load %arg5[%c1_18, %c0_19, %c0_20] : memref<3x12x4xf32, #tpu.memory_space<vmem>>, vector<1x12x4xf32>
    %28 = vector.shape_cast %27 : vector<1x12x4xf32> to vector<12x4xf32>
    %cst_21 = arith.constant dense<0.000000e+00> : vector<160x4xf32>
    %29 = tpu.matmul %26, %28, %cst_21 {dimension_numbers = #tpu.dot_dimension_numbers<[1], [0], [0], [1], [0, 0, 1, 1], [], []>} : vector<160x12xf32>, vector<12x4xf32>, vector<160x4xf32> -> vector<160x4xf32>
    %30 = arith.addf %24, %29 : vector<160x4xf32>
    %31 = vector.extract_strided_slice %15 {offsets = [0, 2, 0], sizes = [10, 16, 12], strides = [1, 1, 1]} : vector<10x18x12xf32> to vector<10x16x12xf32>
    %32 = vector.shape_cast %31 : vector<10x16x12xf32> to vector<160x12xf32>
    %c2_22 = arith.constant 2 : index
    %c0_23 = arith.constant 0 : index
    %c0_24 = arith.constant 0 : index
    %33 = vector.load %arg5[%c2_22, %c0_23, %c0_24] : memref<3x12x4xf32, #tpu.memory_space<vmem>>, vector<1x12x4xf32>
    %34 = vector.shape_cast %33 : vector<1x12x4xf32> to vector<12x4xf32>
    %cst_25 = arith.constant dense<0.000000e+00> : vector<160x4xf32>
    %35 = tpu.matmul %32, %34, %cst_25 {dimension_numbers = #tpu.dot_dimension_numbers<[1], [0], [0], [1], [0, 0, 1, 1], [], []>} : vector<160x12xf32>, vector<12x4xf32>, vector<160x4xf32> -> vector<160x4xf32>
    %36 = arith.addf %30, %35 : vector<160x4xf32>
    %cst_26 = arith.constant 0.000000e+00 : f32
    %37 = vector.broadcast %cst_26 : f32 to vector<160x4xf32>
    %38 = arith.maximumf %36, %37 : vector<160x4xf32>
    %39 = vector.shape_cast %38 : vector<160x4xf32> to vector<10x16x4xf32>
    %cst_27 = arith.constant 0.000000e+00 : f32
    %40 = vector.broadcast %cst_27 : f32 to vector<10x18x4xf32>
    %c0_28 = arith.constant 0 : index
    %c0_29 = arith.constant 0 : index
    %c0_30 = arith.constant 0 : index
    %41 = vector.load %arg11[%c0_28, %c0_29, %c0_30] : memref<10x18x4xf32, #tpu.memory_space<vmem>>, vector<10x18x4xf32>
    tpu.vector_store %arg11[%c0_28, %c0_29, %c0_30], %40 {strides = array<i32>} : memref<10x18x4xf32, #tpu.memory_space<vmem>>, vector<10x18x4xf32>,
    %42 = vector.extract_strided_slice %39 {offsets = [1, 0, 0], sizes = [8, 16, 4], strides = [1, 1, 1]} : vector<10x16x4xf32> to vector<8x16x4xf32>
    %c1_31 = arith.constant 1 : index
    %c1_32 = arith.constant 1 : index
    %c0_33 = arith.constant 0 : index
    %43 = vector.load %arg11[%c1_31, %c1_32, %c0_33] : memref<10x18x4xf32, #tpu.memory_space<vmem>>, vector<8x16x4xf32>
    tpu.vector_store %arg11[%c1_31, %c1_32, %c0_33], %42 {strides = array<i32>} : memref<10x18x4xf32, #tpu.memory_space<vmem>>, vector<8x16x4xf32>,
    %c0_i32_34 = arith.constant 0 : i32
    %44 = arith.cmpi sgt, %arg1, %c0_i32_34 : i32
    %45 = arith.extui %44 : i1 to i32
    %c0_i32_35 = arith.constant 0 : i32
    %46 = arith.cmpi ne, %45, %c0_i32_35 : i32
    scf.if %46 {
      %84 = vector.extract_strided_slice %39 {offsets = [0, 0, 0], sizes = [1, 16, 4], strides = [1, 1, 1]} : vector<10x16x4xf32> to vector<1x16x4xf32>
      %c0_64 = arith.constant 0 : index
      %c1_65 = arith.constant 1 : index
      %c0_66 = arith.constant 0 : index
      %85 = vector.load %arg11[%c0_64, %c1_65, %c0_66] : memref<10x18x4xf32, #tpu.memory_space<vmem>>, vector<1x16x4xf32>
      tpu.vector_store %arg11[%c0_64, %c1_65, %c0_66], %84 {strides = array<i32>} : memref<10x18x4xf32, #tpu.memory_space<vmem>>, vector<1x16x4xf32>,
    } else {
    }
    %c1_i32_36 = arith.constant 1 : i32
    %47 = arith.cmpi slt, %arg1, %c1_i32_36 : i32
    %48 = arith.extui %47 : i1 to i32
    %c0_i32_37 = arith.constant 0 : i32
    %49 = arith.cmpi ne, %48, %c0_i32_37 : i32
    scf.if %49 {
      %84 = vector.extract_strided_slice %39 {offsets = [9, 0, 0], sizes = [1, 16, 4], strides = [1, 1, 1]} : vector<10x16x4xf32> to vector<1x16x4xf32>
      %c9 = arith.constant 9 : index
      %c1_64 = arith.constant 1 : index
      %c0_65 = arith.constant 0 : index
      %85 = vector.load %arg11[%c9, %c1_64, %c0_65] : memref<10x18x4xf32, #tpu.memory_space<vmem>>, vector<1x16x4xf32>
      tpu.vector_store %arg11[%c9, %c1_64, %c0_65], %84 {strides = array<i32>} : memref<10x18x4xf32, #tpu.memory_space<vmem>>, vector<1x16x4xf32>,
    } else {
    }
    %c0_38 = arith.constant 0 : index
    %c0_39 = arith.constant 0 : index
    %c0_40 = arith.constant 0 : index
    %50 = vector.load %arg11[%c0_38, %c0_39, %c0_40] : memref<10x18x4xf32, #tpu.memory_space<vmem>>, vector<10x18x4xf32>
    %51 = vector.extract_strided_slice %50 {offsets = [0, 0, 0], sizes = [8, 18, 4], strides = [1, 1, 1]} : vector<10x18x4xf32> to vector<8x18x4xf32>
    %52 = vector.extract_strided_slice %50 {offsets = [1, 0, 0], sizes = [8, 18, 4], strides = [1, 1, 1]} : vector<10x18x4xf32> to vector<8x18x4xf32>
    %53 = vector.extract_strided_slice %50 {offsets = [2, 0, 0], sizes = [8, 18, 4], strides = [1, 1, 1]} : vector<10x18x4xf32> to vector<8x18x4xf32>
    %54 = tpu.concatenate %51, %52, %53 in 2 : vector<8x18x4xf32>, vector<8x18x4xf32>, vector<8x18x4xf32> -> vector<8x18x12xf32>
    %c0_41 = arith.constant 0 : index
    %c0_42 = arith.constant 0 : index
    %55 = vector.load %arg8[%c0_41, %c0_42] : memref<1x4xf32, #tpu.memory_space<vmem>>, vector<1x4xf32>
    %56 = vector.shape_cast %55 : vector<1x4xf32> to vector<1x4xf32>
    %57 = vector.broadcast %56 : vector<1x4xf32> to vector<128x4xf32>
    %58 = vector.extract_strided_slice %54 {offsets = [0, 0, 0], sizes = [8, 16, 12], strides = [1, 1, 1]} : vector<8x18x12xf32> to vector<8x16x12xf32>
    %59 = vector.shape_cast %58 : vector<8x16x12xf32> to vector<128x12xf32>
    %c0_43 = arith.constant 0 : index
    %c0_44 = arith.constant 0 : index
    %c0_45 = arith.constant 0 : index
    %60 = vector.load %arg7[%c0_43, %c0_44, %c0_45] : memref<3x12x4xf32, #tpu.memory_space<vmem>>, vector<1x12x4xf32>
    %61 = vector.shape_cast %60 : vector<1x12x4xf32> to vector<12x4xf32>
    %cst_46 = arith.constant dense<0.000000e+00> : vector<128x4xf32>
    %62 = tpu.matmul %59, %61, %cst_46 {dimension_numbers = #tpu.dot_dimension_numbers<[1], [0], [0], [1], [0, 0, 1, 1], [], []>} : vector<128x12xf32>, vector<12x4xf32>, vector<128x4xf32> -> vector<128x4xf32>
    %63 = arith.addf %57, %62 : vector<128x4xf32>
    %64 = vector.extract_strided_slice %54 {offsets = [0, 1, 0], sizes = [8, 16, 12], strides = [1, 1, 1]} : vector<8x18x12xf32> to vector<8x16x12xf32>
    %65 = vector.shape_cast %64 : vector<8x16x12xf32> to vector<128x12xf32>
    %c1_47 = arith.constant 1 : index
    %c0_48 = arith.constant 0 : index
    %c0_49 = arith.constant 0 : index
    %66 = vector.load %arg7[%c1_47, %c0_48, %c0_49] : memref<3x12x4xf32, #tpu.memory_space<vmem>>, vector<1x12x4xf32>
    %67 = vector.shape_cast %66 : vector<1x12x4xf32> to vector<12x4xf32>
    %cst_50 = arith.constant dense<0.000000e+00> : vector<128x4xf32>
    %68 = tpu.matmul %65, %67, %cst_50 {dimension_numbers = #tpu.dot_dimension_numbers<[1], [0], [0], [1], [0, 0, 1, 1], [], []>} : vector<128x12xf32>, vector<12x4xf32>, vector<128x4xf32> -> vector<128x4xf32>
    %69 = arith.addf %63, %68 : vector<128x4xf32>
    %70 = vector.extract_strided_slice %54 {offsets = [0, 2, 0], sizes = [8, 16, 12], strides = [1, 1, 1]} : vector<8x18x12xf32> to vector<8x16x12xf32>
    %71 = vector.shape_cast %70 : vector<8x16x12xf32> to vector<128x12xf32>
    %c2_51 = arith.constant 2 : index
    %c0_52 = arith.constant 0 : index
    %c0_53 = arith.constant 0 : index
    %72 = vector.load %arg7[%c2_51, %c0_52, %c0_53] : memref<3x12x4xf32, #tpu.memory_space<vmem>>, vector<1x12x4xf32>
    %73 = vector.shape_cast %72 : vector<1x12x4xf32> to vector<12x4xf32>
    %cst_54 = arith.constant dense<0.000000e+00> : vector<128x4xf32>
    %74 = tpu.matmul %71, %73, %cst_54 {dimension_numbers = #tpu.dot_dimension_numbers<[1], [0], [0], [1], [0, 0, 1, 1], [], []>} : vector<128x12xf32>, vector<12x4xf32>, vector<128x4xf32> -> vector<128x4xf32>
    %75 = arith.addf %69, %74 : vector<128x4xf32>
    %cst_55 = arith.constant 1.000000e+00 : f32
    %76 = vector.broadcast %cst_55 : f32 to vector<128x4xf32>
    %77 = arith.mulf %75, %76 : vector<128x4xf32>
    %c0_56 = arith.constant 0 : index
    %c0_57 = arith.constant 0 : index
    %c0_58 = arith.constant 0 : index
    %c0_59 = arith.constant 0 : index
    %78 = vector.load %arg2[%c0_56, %c0_57, %c0_58, %c0_59] : memref<1x8x16x4xf32, #tpu.memory_space<vmem>>, vector<1x8x16x4xf32>
    %79 = vector.shape_cast %78 : vector<1x8x16x4xf32> to vector<8x16x4xf32>
    %80 = vector.shape_cast %79 : vector<8x16x4xf32> to vector<128x4xf32>
    %81 = arith.addf %77, %80 : vector<128x4xf32>
    %82 = vector.shape_cast %81 : vector<128x4xf32> to vector<1x8x16x4xf32>
    %c0_60 = arith.constant 0 : index
    %c0_61 = arith.constant 0 : index
    %c0_62 = arith.constant 0 : index
    %c0_63 = arith.constant 0 : index
    %83 = vector.load %arg9[%c0_60, %c0_61, %c0_62, %c0_63] : memref<1x8x16x4xf32, #tpu.memory_space<vmem>>, vector<1x8x16x4xf32>
    tpu.vector_store %arg9[%c0_60, %c0_61, %c0_62, %c0_63], %82 {strides = array<i32>} : memref<1x8x16x4xf32, #tpu.memory_space<vmem>>, vector<1x8x16x4xf32>,
    return
  }
  func.func @transform_0(%arg0: i32, %arg1: i32) -> (i32, i32, i32, i32) {
    %c0_i32 = arith.constant 0 : i32
    %c0_i32_0 = arith.constant 0 : i32
    %c0_i32_1 = arith.constant 0 : i32
    return %arg0, %arg1, %c0_i32, %c0_i32_0 : i32, i32, i32, i32
  }
  func.func @transform_1(%arg0: i32, %arg1: i32) -> (i32, i32, i32, i32) {
    %c4_i32 = arith.constant 4 : i32
    %0 = arith.muli %arg1, %c4_i32 : i32
    %c1_i32 = arith.constant 1 : i32
    %1 = arith.subi %0, %c1_i32 : i32
    %c0_i32 = arith.constant 0 : i32
    %2 = arith.maxsi %1, %c0_i32 : i32
    %c0_i32_0 = arith.constant 0 : i32
    %c0_i32_1 = arith.constant 0 : i32
    %c0_i32_2 = arith.constant 0 : i32
    return %arg0, %2, %c0_i32_0, %c0_i32_1 : i32, i32, i32, i32
  }
  func.func @transform_2(%arg0: i32, %arg1: i32) -> (i32, i32, i32, i32) {
    %c1_i32 = arith.constant 1 : i32
    %0 = arith.addi %arg1, %c1_i32 : i32
    %c4_i32 = arith.constant 4 : i32
    %1 = arith.muli %0, %c4_i32 : i32
    %c7_i32 = arith.constant 7 : i32
    %2 = arith.minsi %1, %c7_i32 : i32
    %c0_i32 = arith.constant 0 : i32
    %c0_i32_0 = arith.constant 0 : i32
    %c0_i32_1 = arith.constant 0 : i32
    return %arg0, %2, %c0_i32, %c0_i32_0 : i32, i32, i32, i32
  }
  func.func @transform_3(%arg0: i32, %arg1: i32) -> (i32, i32, i32) {
    %c0_i32 = arith.constant 0 : i32
    %c0_i32_0 = arith.constant 0 : i32
    %c0_i32_1 = arith.constant 0 : i32
    %c0_i32_2 = arith.constant 0 : i32
    return %c0_i32, %c0_i32_0, %c0_i32_1 : i32, i32, i32
  }
  func.func @transform_4(%arg0: i32, %arg1: i32) -> (i32, i32) {
    %c0_i32 = arith.constant 0 : i32
    %c0_i32_0 = arith.constant 0 : i32
    %c0_i32_1 = arith.constant 0 : i32
    return %c0_i32, %c0_i32_0 : i32, i32
  }
  func.func @transform_5(%arg0: i32, %arg1: i32) -> (i32, i32, i32) {
    %c0_i32 = arith.constant 0 : i32
    %c0_i32_0 = arith.constant 0 : i32
    %c0_i32_1 = arith.constant 0 : i32
    %c0_i32_2 = arith.constant 0 : i32
    return %c0_i32, %c0_i32_0, %c0_i32_1 : i32, i32, i32
  }
  func.func @transform_6(%arg0: i32, %arg1: i32) -> (i32, i32) {
    %c0_i32 = arith.constant 0 : i32
    %c0_i32_0 = arith.constant 0 : i32
    %c0_i32_1 = arith.constant 0 : i32
    return %c0_i32, %c0_i32_0 : i32, i32
  }
  func.func @transform_7(%arg0: i32, %arg1: i32) -> (i32, i32, i32, i32) {
    %c0_i32 = arith.constant 0 : i32
    %c0_i32_0 = arith.constant 0 : i32
    %c0_i32_1 = arith.constant 0 : i32
    return %arg0, %arg1, %c0_i32, %c0_i32_0 : i32, i32, i32, i32
  }
}

</mosaic_0001>

<bundles_post_ra>
// kernel: tpu_custom_call.1
= control target key start
LH: loop header
LB: loop body
LE: loop exit
PB: predicated region body
PF: predicated region fallthrough
CT: control target
= control target key end

     0   :  { %s3521_s24 = smov 0   ;;  %s3523_s25 = smov 0   ;;  %s4873_s0 = inlined_call_operand.vmem [shape: f32[2,16,16,4], index: 0, kind: input, shape index: {}]   ;;  %s4874_s1 = inlined_call_operand.vmem [shape: f32[2,16,16,4], index: 1, kind: input, shape index: {}]   ;;  %s4875_s2 = inlined_call_operand.vmem [shape: f32[2,16,16,4], index: 2, kind: input, shape index: {}]   ;;  %s4876_s3 = inlined_call_operand.vmem [shape: f32[3,12,4], index: 3, kind: input, shape index: {}]   ;;  %s4877_s4 = inlined_call_operand.vmem [shape: f32[1,4], index: 4, kind: input, shape index: {}]   ;;  %s4878_s5 = inlined_call_operand.vmem [shape: f32[3,12,4], index: 5, kind: input, shape index: {}]   ;;  %s4879_s6 = inlined_call_operand.vmem [shape: f32[1,4], index: 6, kind: input, shape index: {}]   ;;  %s4880_s7 = inlined_call_operand.vmem [shape: f32[2,16,16,4], index: 7, kind: output, shape index: {}]  }
   0x1   :  { %s3525_s26 = smov 0   ;;  %s3527_s27 = smov 0  }
   0x2   :  { %s3529_s28 = smov 0  }
   0x3 LB: > { %s26_s29 = sadd.s32 1, %s3468_s26  ;;  %s29_s30 = sadd.s32 1, %s3472_s27  ;;  %s3476_s28 = sphi %s3529_s28, %s17_s28   ;;  %s3472_s27 = sphi %s3527_s27, %s4885_s27   ;;  %s3468_s26 = sphi %s3525_s26, %s4884_s26   ;;  %s3464_s25 = sphi %s3523_s25, %s4883_s25   ;;  %s3460_s24 = sphi %s3521_s24, %s4882_s24  }
   0x4   : > { %p27_p0 = scmp.ge.s32.totalorder %s26_s29, 2  ;;  %p2929_p1 = scmp.ge.s32.totalorder %s3476_s28, 1 }
   0x5   : > { %p327_p2 = scmp.lt.s32.totalorder %s3476_s28, 5 }
   0x6   : > { %s4887_s29 = smov (%p27_p0, %s26_s29), 0  ;;  %s4889_s30 = smov (!%p27_p0, %s29_s30), %s3472_s27 }
   0x7   : > { %p328_p3 = pnand %p2929_p1, %p327_p2  ;;  %p31_p4 = scmp.ge.s32.totalorder %s4889_s30, 2 }
   0x8   : > { %s2930_s8 = sshll.u32 (!%p328_p3), %s3460_s24, 3  ;;  %p398_p5 = scmp.lt.s32.totalorder (!%p328_p3), %s3464_s25, 1 }
   0x9   : > { %s4891_s30 = smov (%p31_p4, %s4889_s30), 0  ;;  %331 = sbr.rel (%p328_p3) target bundleno = 913 (0x391), region = 48 }
   0xa   : > { %p400_p6 = scmp.lt.s32.totalorder (!%p328_p3), %s2930_s8, 15  ;;  %s2934_s9 = sshll.u32 (!%p328_p3), %s3460_s24, 2 }
   0xb   : > { %s2935_s11 = sadd.s32 (!%p328_p3), 4294967295, %s2934_s9  ;;  %s3084_s14 = sadd.s32 (!%p328_p3), 4, %s2934_s9 }
   0xc   : > { %p410_p7 = scmp.gt.s32.totalorder (!%p328_p3), %s2935_s11, 0  ;;  %p429_p8 = scmp.lt.s32.totalorder (!%p328_p3), %s3084_s14, 7 }
   0xd   : > { %p2949_p11 = scmp.le.s32.totalorder (!%p328_p3), %s3460_s24, 0 }
   0xe   : > { %vm457_vm0 = vcmask 31744   ;;  %vm460_vm1 = vcmask 25600   ;;  %v3478_v0 = vmov 0.0   ;;  %s4893_s25 = smov (!%p398_p5, %s3464_s25), 1  ;;  %s4895_s8 = smov (!%p400_p6, %s2930_s8), 15 }
   0xf   : > { %465 = vst.msk [vmem:[#allocation2 + $0x30] sm:$0xff] %vm457_vm0, %v3478_v0  ;;  %458 = vst.msk [vmem:[#allocation2] sm:$0xff] %vm457_vm0, %v3478_v0  ;;  %s3637_s10 = sshll.u32 %s4893_s25, 5  ;;  %s2931_s12 = sshll.u32 %s4895_s8, 1 }
  0x10   : > { %459 = vst.msk [vmem:[#allocation2 + $0x8] sm:$0xff] %vm457_vm0, %v3478_v0  ;;  %462 = vst.msk [vmem:[#allocation2 + $0x18] sm:$0xff] %vm457_vm0, %v3478_v0  ;;  %s404_s13 = sadd.s32 %s3637_s10, %s2931_s12  ;;  %s4897_s11 = smov (!%p410_p7, %s2935_s11), 0 }
  0x11   : > { %463 = vst.msk [vmem:[#allocation2 + $0x20] sm:$0xff] %vm457_vm0, %v3478_v0  ;;  %466 = vst.msk [vmem:[#allocation2 + $0x38] sm:$0xff] %vm457_vm0, %v3478_v0  ;;  %s2933_s15 = sshll.u32 %s404_s13, 3  ;;  %s4899_s14 = smov (!%p429_p8, %s3084_s14), 7 }
  0x12   : > { %468 = vst.msk [vmem:[#allocation2 + $0x48] sm:$0xff] %vm457_vm0, %v3478_v0  ;;  %469 = vst.msk [vmem:[#allocation2 + $0x50] sm:$0xff] %vm457_vm0, %v3478_v0  ;;  %s3643_s18 = scalar_lea.vmem %s4873_s0, %s2933_s15  ;;  %s3648_s21 = scalar_lea.vmem %s4880_s7, %s2933_s15 }
  0x13   : > { %471 = vst.msk [vmem:[#allocation2 + $0x60] sm:$0xff] %vm457_vm0, %v3478_v0  ;;  %472 = vst.msk [vmem:[#allocation2 + $0x68] sm:$0xff] %vm457_vm0, %v3478_v0  ;;  %v495_v1 = vld [vmem:[%s3643_s18] sm:$0xff]  ;;  %v496_v2 = vld [vmem:[%s3643_s18 + $0x8] sm:$0xff]  ;;  %s2936_s22 = sshll.u32 %s4897_s11, 1  ;;  %s2941_s25 = sshll.u32 %s4899_s14, 1 }
  0x14   : > { %474 = vst.msk [vmem:[#allocation2 + $0x78] sm:$0xff] %vm457_vm0, %v3478_v0  ;;  %475 = vst.msk [vmem:[#allocation2 + $0x80] sm:$0xff] %vm457_vm0, %v3478_v0  ;;  %v497_v3 = vld [vmem:[%s3643_s18 + $0x10] sm:$0xff]  ;;  %v498_v4 = vld [vmem:[%s3643_s18 + $0x18] sm:$0xff]  ;;  %p3670_p9 = scmp.lt.s32.totalorder %s2936_s22, 15  ;;  %p434_p10 = scmp.lt.s32.totalorder %s2941_s25, 15 }
  0x15   : > { %477 = vst.msk [vmem:[#allocation2 + $0x90] sm:$0xff] %vm457_vm0, %v3478_v0  ;;  %478 = vst.msk [vmem:[#allocation2 + $0x98] sm:$0xff] %vm457_vm0, %v3478_v0  ;;  %v499_v5 = vld [vmem:[%s3643_s18 + $0x20] sm:$0xff]  ;;  %v500_v6 = vld [vmem:[%s3643_s18 + $0x28] sm:$0xff] }
  0x16   : > { %480 = vst.msk [vmem:[#allocation2 + $0xa8] sm:$0xff] %vm457_vm0, %v3478_v0  ;;  %481 = vst.msk [vmem:[#allocation2 + $0xb0] sm:$0xff] %vm457_vm0, %v3478_v0  ;;  %v501_v7 = vld [vmem:[%s3643_s18 + $0x30] sm:$0xff]  ;;  %v502_v8 = vld [vmem:[%s3643_s18 + $0x38] sm:$0xff]  ;;  %s4901_s22 = smov (!%p3670_p9, %s2936_s22), 15  ;;  %s4903_s25 = smov (!%p434_p10, %s2941_s25), 15 }
  0x17   : > { %483 = vst.msk [vmem:[#allocation2 + $0xc0] sm:$0xff] %vm457_vm0, %v3478_v0  ;;  %484 = vst.msk [vmem:[#allocation2 + $0xc8] sm:$0xff] %vm457_vm0, %v3478_v0  ;;  %v503_v9 = vld [vmem:[%s3643_s18 + $0x40] sm:$0xff]  ;;  %v504_v10 = vld [vmem:[%s3643_s18 + $0x48] sm:$0xff]  ;;  %s2937_s8 = sshll.u32 %s4901_s22, 1  ;;  %s2942_s11 = sshll.u32 %s4903_s25, 1 }
  0x18   : > { %486 = vst.msk [vmem:[#allocation2 + $0xd8] sm:$0xff] %vm457_vm0, %v3478_v0  ;;  %487 = vst.msk [vmem:[#allocation2 + $0xe0] sm:$0xff] %vm457_vm0, %v3478_v0  ;;  %v505_v11 = vld [vmem:[%s3643_s18 + $0x50] sm:$0xff]  ;;  %v506_v12 = vld [vmem:[%s3643_s18 + $0x58] sm:$0xff]  ;;  %s419_s9 = sadd.s32 %s2937_s8, %s3637_s10  ;;  %s438_s13 = sadd.s32 %s2942_s11, %s3637_s10 }
  0x19   : > { %489 = vst.msk [vmem:[#allocation2 + $0xf0] sm:$0xff] %vm457_vm0, %v3478_v0  ;;  %490 = vst.msk [vmem:[#allocation2 + $0xf8] sm:$0xff] %vm457_vm0, %v3478_v0  ;;  %v507_v13 = vld [vmem:[%s3643_s18 + $0x60] sm:$0xff]  ;;  %v508_v14 = vld [vmem:[%s3643_s18 + $0x68] sm:$0xff]  ;;  %s2939_s12 = sshll.u32 %s419_s9, 3  ;;  %s2944_s17 = sshll.u32 %s438_s13, 3 }
  0x1a   : > { %492 = vst.msk [vmem:[#allocation2 + $0x108] sm:$0xff] %vm457_vm0, %v3478_v0  ;;  %493 = vst.msk [vmem:[#allocation2 + $0x110] sm:$0xff] %vm457_vm0, %v3478_v0  ;;  %v509_v15 = vld [vmem:[%s3643_s18 + $0x70] sm:$0xff]  ;;  %v510_v16 = vld [vmem:[%s3643_s18 + $0x78] sm:$0xff]  ;;  %s421_s16 = scalar_lea.vmem %s4874_s1, %s2939_s12  ;;  %s440_s23 = scalar_lea.vmem %s4875_s2, %s2944_s17 }
  0x1b   : > { %467 = vst.msk [vmem:[#allocation2 + $0x40] sm:$0x3] %vm460_vm1, %v3478_v0  ;;  %461 = vst.msk [vmem:[#allocation2 + $0x10] sm:$0x3] %vm460_vm1, %v3478_v0 }
  0x1c   : > { %464 = vst.msk [vmem:[#allocation2 + $0x28] sm:$0x3] %vm460_vm1, %v3478_v0  ;;  %470 = vst.msk [vmem:[#allocation2 + $0x58] sm:$0x3] %vm460_vm1, %v3478_v0 }
  0x1d   : > { %473 = vst.msk [vmem:[#allocation2 + $0x70] sm:$0x3] %vm460_vm1, %v3478_v0  ;;  %476 = vst.msk [vmem:[#allocation2 + $0x88] sm:$0x3] %vm460_vm1, %v3478_v0 }
  0x1e   : > { %479 = vst.msk [vmem:[#allocation2 + $0xa0] sm:$0x3] %vm460_vm1, %v3478_v0  ;;  %482 = vst.msk [vmem:[#allocation2 + $0xb8] sm:$0x3] %vm460_vm1, %v3478_v0 }
  0x1f   : > { %485 = vst.msk [vmem:[#allocation2 + $0xd0] sm:$0x3] %vm460_vm1, %v3478_v0  ;;  %488 = vst.msk [vmem:[#allocation2 + $0xe8] sm:$0x3] %vm460_vm1, %v3478_v0 }
  0x20   : > { %491 = vst.msk [vmem:[#allocation2 + $0x100] sm:$0x3] %vm460_vm1, %v3478_v0  ;;  %494 = vst.msk [vmem:[#allocation2 + $0x118] sm:$0x3] %vm460_vm1, %v3478_v0 }
  0x21   : > { %512 = vst.msk [vmem:[#allocation2 + $0x31] sm:$0xff] %vm457_vm0, %v495_v1  ;;  %513 = vst.msk [vmem:[#allocation2 + $0x39] sm:$0xff] %vm457_vm0, %v496_v2 }
  0x22   : > { %514 = vst.msk [vmem:[#allocation2 + $0x49] sm:$0xff] %vm457_vm0, %v497_v3  ;;  %515 = vst.msk [vmem:[#allocation2 + $0x51] sm:$0xff] %vm457_vm0, %v498_v4 }
  0x23   : > { %516 = vst.msk [vmem:[#allocation2 + $0x61] sm:$0xff] %vm457_vm0, %v499_v5  ;;  %517 = vst.msk [vmem:[#allocation2 + $0x69] sm:$0xff] %vm457_vm0, %v500_v6 }
  0x24   : > { %518 = vst.msk [vmem:[#allocation2 + $0x79] sm:$0xff] %vm457_vm0, %v501_v7  ;;  %519 = vst.msk [vmem:[#allocation2 + $0x81] sm:$0xff] %vm457_vm0, %v502_v8  ;;  %531 = sbr.rel (%p2949_p11) target bundleno = 44 (0x2c), region = 52 }
  0x25   : > { %520 = vst.msk [vmem:[#allocation2 + $0x91] sm:$0xff] %vm457_vm0, %v503_v9  ;;  %521 = vst.msk [vmem:[#allocation2 + $0x99] sm:$0xff] %vm457_vm0, %v504_v10 }
  0x26   : > { %522 = vst.msk [vmem:[#allocation2 + $0xa9] sm:$0xff] %vm457_vm0, %v505_v11  ;;  %523 = vst.msk [vmem:[#allocation2 + $0xb1] sm:$0xff] %vm457_vm0, %v506_v12 }
  0x27   : > { %524 = vst.msk [vmem:[#allocation2 + $0xc1] sm:$0xff] %vm457_vm0, %v507_v13  ;;  %525 = vst.msk [vmem:[#allocation2 + $0xc9] sm:$0xff] %vm457_vm0, %v508_v14 }
  0x28   : > { %526 = vst.msk [vmem:[#allocation2 + $0xd9] sm:$0xff] %vm457_vm0, %v509_v15  ;;  %527 = vst.msk [vmem:[#allocation2 + $0xe1] sm:$0xff] %vm457_vm0, %v510_v16 }
  0x29   : > { %v532_v17 = vld [vmem:[%s421_s16] sm:$0xff]  ;;  %v533_v18 = vld [vmem:[%s421_s16 + $0x8] sm:$0xff]  ;;  %v534_v19 = vld [vmem:[%s421_s16 + $0x10] sm:$0xff] }
  0x2a   : > { %536 = vst.msk [vmem:[#allocation2 + $0x1] sm:$0xff] %vm457_vm0, %v532_v17  ;;  %537 = vst.msk [vmem:[#allocation2 + $0x9] sm:$0xff] %vm457_vm0, %v533_v18  ;;  %v535_v20 = vld [vmem:[%s421_s16 + $0x18] sm:$0xff] }
  0x2b   : > { %538 = vst.msk [vmem:[#allocation2 + $0x19] sm:$0xff] %vm457_vm0, %v534_v19  ;;  %539 = vst.msk [vmem:[#allocation2 + $0x21] sm:$0xff] %vm457_vm0, %v535_v20 }
  0x2c PF: > { %p2950_p12 = scmp.ge.s32.totalorder %s3460_s24, 1 }
  0x2e   : > { %543 = sbr.rel (%p2950_p12) target bundleno = 54 (0x36), region = 56 }
  0x33   : > { %v544_v21 = vld [vmem:[%s440_s23] sm:$0xff]  ;;  %v545_v22 = vld [vmem:[%s440_s23 + $0x8] sm:$0xff]  ;;  %v546_v23 = vld [vmem:[%s440_s23 + $0x10] sm:$0xff] }
  0x34   : > { %549 = vst.msk [vmem:[#allocation2 + $0xf1] sm:$0xff] %vm457_vm0, %v544_v21  ;;  %550 = vst.msk [vmem:[#allocation2 + $0xf9] sm:$0xff] %vm457_vm0, %v545_v22  ;;  %v547_v24 = vld [vmem:[%s440_s23 + $0x18] sm:$0xff] }
  0x35   : > { %551 = vst.msk [vmem:[#allocation2 + $0x109] sm:$0xff] %vm457_vm0, %v546_v23  ;;  %552 = vst.msk [vmem:[#allocation2 + $0x111] sm:$0xff] %vm457_vm0, %v547_v24 }
  0x36 PF: > { %v3716_v25 = vld [vmem:[#allocation2 + $0x30] sm:$0xff]  ;;  %v3718_v26 = vld [vmem:[#allocation2 + $0x18] sm:$0xff]  ;;  %1720 = vst.msk [vmem:[#allocation3 + $0x20] sm:$0xff] %vm457_vm0, %v3478_v0  ;;  %1719 = vst.msk [vmem:[#allocation3 + $0x18] sm:$0xff] %vm457_vm0, %v3478_v0  ;;  %s3479_s10 = smov 8   ;;  %s3480_s22 = smov 4  }
  0x37   : > { %1721 = vst.msk [vmem:[#allocation3 + $0x28] sm:$0x3] %vm460_vm1, %v3478_v0  ;;  %1724 = vst.msk [vmem:[#allocation3 + $0x40] sm:$0x3] %vm460_vm1, %v3478_v0  ;;  %712 = vrot.lane.b32.xlu1 %v3716_v25, %s3479_s10  ;;  %619 = vrot.lane.b32.xlu0 %v3718_v26, %s3480_s22  ;;  %v3784_v27 = vld [vmem:[#allocation2 + $0x38] sm:$0xff]  ;;  %v3786_v28 = vld [vmem:[#allocation2 + $0x20] sm:$0xff] }
  0x38   : > { %1723 = vst.msk [vmem:[#allocation3 + $0x38] sm:$0xff] %vm457_vm0, %v3478_v0  ;;  %1722 = vst.msk [vmem:[#allocation3 + $0x30] sm:$0xff] %vm457_vm0, %v3478_v0  ;;  %vm933_vm2 = vcmask 1043456   ;;  %v3796_v29 = vld [vmem:[#allocation2 + $0x50] sm:$0xff]  ;;  %v3798_v30 = vld [vmem:[#allocation2 + $0x48] sm:$0xff]  ;;  %vm832_vm3 = vcmask 64512  }
  0x39   : > { %1726 = vst.msk [vmem:[#allocation3 + $0x50] sm:$0xff] %vm457_vm0, %v3478_v0  ;;  %1725 = vst.msk [vmem:[#allocation3 + $0x48] sm:$0xff] %vm457_vm0, %v3478_v0  ;;  %v871_v31 = vld [vmem:[%s4876_s3 + $0x8] sm:$0xf]  ;;  %v870_v32 = vld [vmem:[%s4876_s3] sm:$0xff]  ;;  %vm872_vm4 = vcmask 97280  }
  0x3a   : > { %1727 = vst.msk [vmem:[#allocation3 + $0x58] sm:$0x3] %vm460_vm1, %v3478_v0  ;;  %1730 = vst.msk [vmem:[#allocation3 + $0x70] sm:$0x3] %vm460_vm1, %v3478_v0  ;;  %3205 = vmatprep.subr.msk.mxu0 %vm933_vm2, %v871_v31  ;;  %3391 = vmatprep.subr.msk.mxu1 %vm933_vm2, %v871_v31  ;;  %v3818_v33 = vld [vmem:[#allocation2 + $0x68] sm:$0xff]  ;;  %v3820_v34 = vld [vmem:[#allocation2 + $0x60] sm:$0xff] }
  0x3b   : > { %1729 = vst.msk [vmem:[#allocation3 + $0x68] sm:$0xff] %vm457_vm0, %v3478_v0  ;;  %1728 = vst.msk [vmem:[#allocation3 + $0x60] sm:$0xff] %vm457_vm0, %v3478_v0  ;;  %714 = vrot.lane.b32.xlu1 %v3784_v27, %s3479_s10  ;;  %621 = vrot.lane.b32.xlu0 %v3786_v28, %s3480_s22  ;;  %v3830_v35 = vld [vmem:[#allocation2 + $0x80] sm:$0xff]  ;;  %v3832_v36 = vld [vmem:[#allocation2 + $0x78] sm:$0xff]  ;;  %vm1132_vm5 = vcmask 1046528   ;;  %vm1414_vm6 = vcmask 1045504  }
  0x3c   : > { %1732 = vst.msk [vmem:[#allocation3 + $0x80] sm:$0xff] %vm457_vm0, %v3478_v0  ;;  %1731 = vst.msk [vmem:[#allocation3 + $0x78] sm:$0xff] %vm457_vm0, %v3478_v0  ;;  %3206 = vmatpush3.msk.msra.mxu0 %vm933_vm2, %v871_v31  ;;  %3393 = vmatpush3.msk.msra.mxu1 %vm933_vm2, %v871_v31  ;;  %v3842_v37 = vld [vmem:[#allocation2 + $0x98] sm:$0xff]  ;;  %v3844_v38 = vld [vmem:[#allocation2 + $0x90] sm:$0xff] }
  0x3d   : > { %1733 = vst.msk [vmem:[#allocation3 + $0x88] sm:$0x3] %vm460_vm1, %v3478_v0  ;;  %1736 = vst.msk [vmem:[#allocation3 + $0xa0] sm:$0x3] %vm460_vm1, %v3478_v0  ;;  %3207 = vmatprep.subr.mxu0 %v870_v32  ;;  %3392 = vmatprep.subr.mxu1 %v870_v32  ;;  %v3849_v39 = vld [vmem:[%s4876_s3 + $0x28] sm:$0xf] }
  0x3e   : > { %1735 = vst.msk [vmem:[#allocation3 + $0x98] sm:$0xff] %vm457_vm0, %v3478_v0  ;;  %1734 = vst.msk [vmem:[#allocation3 + $0x90] sm:$0xff] %vm457_vm0, %v3478_v0  ;;  %3208 = vmatpush3.msra.mxu0 %v870_v32  ;;  %3394 = vmatpush3.msra.mxu1 %v870_v32  ;;  %v3861_v40 = vld [vmem:[#allocation2 + $0xb0] sm:$0xff]  ;;  %v3863_v41 = vld [vmem:[#allocation2 + $0xa8] sm:$0xff] }
  0x3f   : > { %1738 = vst.msk [vmem:[#allocation3 + $0xb0] sm:$0xff] %vm457_vm0, %v3478_v0  ;;  %1737 = vst.msk [vmem:[#allocation3 + $0xa8] sm:$0xff] %vm457_vm0, %v3478_v0  ;;  %627 = vrot.lane.b32.xlu1 %v3784_v27, %s3480_s22  ;;  %625 = vrot.lane.b32.xlu0 %v3716_v25, %s3480_s22  ;;  %v3873_v42 = vld [vmem:[#allocation2 + $0xc8] sm:$0xff]  ;;  %v3875_v43 = vld [vmem:[#allocation2 + $0xc0] sm:$0xff] }
  0x40   : > { %1739 = vst.msk [vmem:[#allocation3 + $0xb8] sm:$0x3] %vm460_vm1, %v3478_v0  ;;  %1742 = vst.msk [vmem:[#allocation3 + $0xd0] sm:$0x3] %vm460_vm1, %v3478_v0  ;;  %3273 = vmatprep.subr.msk.mxu0 %vm933_vm2, %v3849_v39  ;;  %v583_v44 = vld [vmem:[#allocation2 + $0xf0] sm:$0xff]  ;;  %v3885_v45 = vld [vmem:[#allocation2 + $0xd8] sm:$0xff] }
  0x41   : > { %1741 = vst.msk [vmem:[#allocation3 + $0xc8] sm:$0xff] %vm457_vm0, %v3478_v0  ;;  %1740 = vst.msk [vmem:[#allocation3 + $0xc0] sm:$0xff] %vm457_vm0, %v3478_v0  ;;  %v584_v46 = vld [vmem:[#allocation2 + $0xf8] sm:$0xff]  ;;  %v3890_v47 = vld [vmem:[#allocation2 + $0xe0] sm:$0xff] }
  0x42   : > { %1716 = vst.msk [vmem:[#allocation3] sm:$0xff] %vm457_vm0, %v3478_v0  ;;  %1717 = vst.msk [vmem:[#allocation3 + $0x8] sm:$0xff] %vm457_vm0, %v3478_v0  ;;  %v3895_v48 = vld [vmem:[%s4876_s3 + $0x18] sm:$0xf]  ;;  %v3902_v49 = vld [vmem:[#allocation2 + $0x28] sm:$0x3] }
  0x43   : > { %1718 = vst.msk [vmem:[#allocation3 + $0x10] sm:$0x3] %vm460_vm1, %v3478_v0  ;;  %1745 = vst.msk [vmem:[#allocation3 + $0xe8] sm:$0x3] %vm460_vm1, %v3478_v0  ;;  %720 = vrot.lane.b32.xlu1 %v3796_v29, %s3479_s10  ;;  %718 = vrot.lane.b32.xlu0 %v3798_v30, %s3479_s10  ;;  %v586_v50 = vld [vmem:[#allocation2 + $0x108] sm:$0xff]  ;;  %v587_v51 = vld [vmem:[#allocation2 + $0x110] sm:$0xff] }
  0x44   : > { %1743 = vst.msk [vmem:[#allocation3 + $0xd8] sm:$0xff] %vm457_vm0, %v3478_v0  ;;  %1744 = vst.msk [vmem:[#allocation3 + $0xe0] sm:$0xff] %vm457_vm0, %v3478_v0  ;;  %3239 = vmatprep.subr.msk.mxu1 %vm933_vm2, %v3895_v48  ;;  %v3910_v52 = vld [vmem:[#allocation2 + $0x40] sm:$0x3]  ;;  %v3918_v53 = vld [vmem:[#allocation2 + $0x58] sm:$0x3] }
  0x45   : > { %v3924_v54 = vld [vmem:[#allocation2 + $0x70] sm:$0x3]  ;;  %v3930_v55 = vld [vmem:[#allocation2 + $0x88] sm:$0x3]  ;;  %v3936_v56 = vld [vmem:[#allocation2 + $0xa0] sm:$0x3] }
  0x46   : > { %v3942_v57 = vld [vmem:[#allocation2 + $0xb8] sm:$0x3]  ;;  %v3948_v58 = vld [vmem:[#allocation2 + $0xd0] sm:$0x3]  ;;  %v3954_v59 = vld [vmem:[#allocation2 + $0xe8] sm:$0x3] }
  0x47   : > { %633 = vrot.lane.b32.xlu1 %v3796_v29, %s3480_s22  ;;  %631 = vrot.lane.b32.xlu0 %v3798_v30, %s3480_s22  ;;  %v585_v60 = vld [vmem:[#allocation2 + $0x100] sm:$0x3]  ;;  %v588_v62 = vld [vmem:[#allocation2 + $0x118] sm:$0x3]  ;;  %v554_v3 = vld [vmem:[#allocation2 + $0x8] sm:$0xff] }
  0x48   : > { %v553_v61 = vld [vmem:[#allocation2] sm:$0xff] }
  0x49   : > { %v2996_v8 = vld [vmem:[%s4876_s3 + $0x20] sm:$0xff] }
  0x4b   : > { %726 = vrot.lane.b32.xlu1 %v3818_v33, %s3479_s10  ;;  %724 = vrot.lane.b32.xlu0 %v3820_v34, %s3479_s10 }
  0x4f   : > { %639 = vrot.lane.b32.xlu1 %v3818_v33, %s3480_s22  ;;  %637 = vrot.lane.b32.xlu0 %v3820_v34, %s3480_s22 }
  0x53   : > { %732 = vrot.lane.b32.xlu1 %v3830_v35, %s3479_s10  ;;  %730 = vrot.lane.b32.xlu0 %v3832_v36, %s3479_s10 }
  0x57   : > { %645 = vrot.lane.b32.xlu1 %v3830_v35, %s3480_s22  ;;  %643 = vrot.lane.b32.xlu0 %v3832_v36, %s3480_s22 }
  0x5b   : > { %738 = vrot.lane.b32.xlu1 %v3842_v37, %s3479_s10  ;;  %736 = vrot.lane.b32.xlu0 %v3844_v38, %s3479_s10 }
  0x5f   : > { %651 = vrot.lane.b32.xlu1 %v3842_v37, %s3480_s22  ;;  %649 = vrot.lane.b32.xlu0 %v3844_v38, %s3480_s22 }
  0x63   : > { %744 = vrot.lane.b32.xlu1 %v3861_v40, %s3479_s10  ;;  %742 = vrot.lane.b32.xlu0 %v3863_v41, %s3479_s10 }
  0x67   : > { %657 = vrot.lane.b32.xlu1 %v3861_v40, %s3480_s22  ;;  %655 = vrot.lane.b32.xlu0 %v3863_v41, %s3480_s22 }
  0x6b   : > { %750 = vrot.lane.b32.xlu1 %v3873_v42, %s3479_s10  ;;  %748 = vrot.lane.b32.xlu0 %v3875_v43, %s3479_s10 }
  0x6f   : > { %663 = vrot.lane.b32.xlu1 %v3873_v42, %s3480_s22  ;;  %661 = vrot.lane.b32.xlu0 %v3875_v43, %s3480_s22 }
  0x73   : > { %673 = vrot.lane.b32.xlu1 %v583_v44, %s3480_s22  ;;  %754 = vrot.lane.b32.xlu0 %v3885_v45, %s3479_s10 }
  0x77   : > { %675 = vrot.lane.b32.xlu1 %v584_v46, %s3480_s22  ;;  %756 = vrot.lane.b32.xlu0 %v3890_v47, %s3479_s10 }
  0x7b   : > { %623 = vrot.lane.b32.xlu1 %v3902_v49, %s3480_s22  ;;  %766 = vrot.lane.b32.xlu0 %v586_v50, %s3479_s10 }
  0x7f   : > { %768 = vrot.lane.b32.xlu1 %v587_v51, %s3479_s10  ;;  %667 = vrot.lane.b32.xlu0 %v3885_v45, %s3480_s22 }
  0x83   : > { %716 = vrot.lane.b32.xlu1 %v3910_v52, %s3479_s10  ;;  %669 = vrot.lane.b32.xlu0 %v3890_v47, %s3480_s22 }
  0x87   : > { %762 = vrot.lane.b32.xlu1 %v584_v46, %s3479_s10  ;;  %760 = vrot.lane.b32.xlu0 %v583_v44, %s3479_s10 }
  0x8b   : > { %629 = vrot.lane.b32.xlu0 %v3910_v52, %s3480_s22  ;;  %722 = vrot.lane.b32.xlu1 %v3918_v53, %s3479_s10 }
  0x8f   : > { %635 = vrot.lane.b32.xlu0 %v3918_v53, %s3480_s22  ;;  %728 = vrot.lane.b32.xlu1 %v3924_v54, %s3479_s10 }
  0x93   : > { %641 = vrot.lane.b32.xlu0 %v3924_v54, %s3480_s22  ;;  %734 = vrot.lane.b32.xlu1 %v3930_v55, %s3479_s10 }
  0x97   : > { %647 = vrot.lane.b32.xlu0 %v3930_v55, %s3480_s22  ;;  %740 = vrot.lane.b32.xlu1 %v3936_v56, %s3479_s10 }
  0x9b   : > { %653 = vrot.lane.b32.xlu0 %v3936_v56, %s3480_s22  ;;  %746 = vrot.lane.b32.xlu1 %v3942_v57, %s3479_s10 }
  0x9f   : > { %659 = vrot.lane.b32.xlu0 %v3942_v57, %s3480_s22  ;;  %752 = vrot.lane.b32.xlu1 %v3948_v58, %s3479_s10 }
  0xa3   : > { %665 = vrot.lane.b32.xlu0 %v3948_v58, %s3480_s22  ;;  %758 = vrot.lane.b32.xlu1 %v3954_v59, %s3479_s10 }
  0xa7   : > { %671 = vrot.lane.b32.xlu0 %v3954_v59, %s3480_s22  ;;  %764 = vrot.lane.b32.xlu1 %v585_v60, %s3479_s10 }
  0xa9   : > { %v713_v63 = vpop.permute.xlu1 %712  ;;  %v620_v0 = vpop.permute.xlu0 %619 }
  0xaa   : > { %v802_v1 = vsel %vm457_vm0, %v553_v61, %v620_v0 }
  0xab   : > { %677 = vrot.lane.b32.xlu0 %v585_v60, %s3480_s22  ;;  %770 = vrot.lane.b32.xlu1 %v588_v62, %s3479_s10  ;;  %v833_v2 = vsel %vm832_vm3, %v802_v1, %v713_v63 }
  0xac   : > { %3209 = vmatprep.mubr.msk.f32.mxu0 %vm872_vm4, %v833_v2  ;;  %v1133_v9 = vrot.slane %v833_v2, 1  ;;  %v1415_v10 = vrot.slane %v833_v2, 2 }
  0xad   : > { %v715_v4 = vpop.permute.xlu1 %714  ;;  %v622_v5 = vpop.permute.xlu0 %621 }
  0xae   : > { %v803_v6 = vsel %vm457_vm0, %v554_v3, %v622_v5 }
  0xaf   : > { %v3970_v7 = vsel %vm832_vm3, %v803_v6, %v715_v4 }
  0xb0   : > { %v1134_v11 = vrot.slane %v3970_v7, 1  ;;  %v1416_v12 = vrot.slane %v3970_v7, 2  ;;  %3210 = vmatmul.mubr.msk.f32.vlgmr.msra.gmra.mxu0 %vm872_vm4, %v3970_v7 }
  0xb1   : > { %v628_v13 = vpop.permute.xlu1 %627  ;;  %v626_v14 = vpop.permute.xlu0 %625  ;;  %3274 = vmatpush3.msk.msra.mxu0 %vm933_vm2, %v3849_v39 }
  0xb2   : > { %3275 = vmatprep.subr.mxu0 %v2996_v8  ;;  %v3984_v15 = vsel %vm1132_vm5, %v1133_v9, %v1134_v11  ;;  %v3989_v16 = vsel %vm1414_vm6, %v1415_v10, %v1416_v12  ;;  %v806_v17 = vsel %vm457_vm0, %v3786_v28, %v628_v13  ;;  %v805_v18 = vsel %vm457_vm0, %v3718_v26, %v626_v14 }
  0xb3   : > { %3276 = vmatpush3.msra.mxu0 %v2996_v8 }
  0xb5   : > { %v721_v19 = vpop.permute.xlu1 %720  ;;  %v719_v20 = vpop.permute.xlu0 %718 }
  0xb6   : > { %v3996_v21 = vsel %vm832_vm3, %v806_v17, %v721_v19  ;;  %v836_v22 = vsel %vm832_vm3, %v805_v18, %v719_v20 }
  0xb7   : > { %v1139_v23 = vrot.slane %v3996_v21, 1  ;;  %v1421_v24 = vrot.slane %v3996_v21, 2  ;;  %v1138_v31 = vrot.slane %v836_v22, 1  ;;  %v1420_v32 = vrot.slane %v836_v22, 2  ;;  %3212 = vmatprep.mubr.msk.f32.mxu0 %vm872_vm4, %v836_v22 }
  0xb8   : > { %3213 = vmatmul.mubr.msk.f32.gmra.mxu0 %vm872_vm4, %v3996_v21 }
  0xb9   : > { %v634_v28 = vpop.permute.xlu1 %633  ;;  %v632_v26 = vpop.permute.xlu0 %631  ;;  %v4007_v39 = vsel %vm1132_vm5, %v1138_v31, %v1139_v23  ;;  %v4012_v44 = vsel %vm1414_vm6, %v1420_v32, %v1421_v24 }
  0xba   : > { %v809_v46 = vsel %vm457_vm0, %v3784_v27, %v634_v28  ;;  %v808_v50 = vsel %vm457_vm0, %v3716_v25, %v632_v26 }
  0xbd   : > { %v727_v51 = vpop.permute.xlu1 %726  ;;  %v725_v60 = vpop.permute.xlu0 %724 }
  0xbe   : > { %v4019_v61 = vsel %vm832_vm3, %v809_v46, %v727_v51  ;;  %v839_v62 = vsel %vm832_vm3, %v808_v50, %v725_v60 }
  0xbf   : > { %v1144_v63 = vrot.slane %v4019_v61, 1  ;;  %v1426_v0 = vrot.slane %v4019_v61, 2  ;;  %v1143_v1 = vrot.slane %v839_v62, 1  ;;  %v1425_v2 = vrot.slane %v839_v62, 2  ;;  %3215 = vmatprep.mubr.msk.f32.mxu0 %vm872_vm4, %v839_v62 }
  0xc0   : > { %3216 = vmatmul.mubr.msk.f32.gmra.mxu0 %vm872_vm4, %v4019_v61 }
  0xc1   : > { %v640_v27 = vpop.permute.xlu1 %639  ;;  %v638_v25 = vpop.permute.xlu0 %637  ;;  %v4030_v3 = vsel %vm1132_vm5, %v1143_v1, %v1144_v63  ;;  %v4035_v4 = vsel %vm1414_vm6, %v1425_v2, %v1426_v0 }
  0xc2   : > { %v812_v5 = vsel %vm457_vm0, %v3796_v29, %v640_v27  ;;  %v811_v6 = vsel %vm457_vm0, %v3798_v30, %v638_v25 }
  0xc5   : > { %v733_v8 = vpop.permute.xlu1 %732  ;;  %v731_v9 = vpop.permute.xlu0 %730 }
  0xc6   : > { %v4042_v10 = vsel %vm832_vm3, %v812_v5, %v733_v8  ;;  %v4045_v13 = vsel %vm832_vm3, %v811_v6, %v731_v9 }
  0xc7   : > { %3218 = vmatprep.mubr.msk.f32.mxu0 %vm872_vm4, %v4045_v13 }
  0xc8   : > { %3219 = vmatmul.mubr.msk.f32.gmra.mxu0 %vm872_vm4, %v4042_v10 }
  0xc9   : > { %v646_v14 = vpop.permute.xlu1 %645  ;;  %v644_v17 = vpop.permute.xlu0 %643 }
  0xca   : > { %v815_v29 = vsel %vm457_vm0, %v3818_v33, %v646_v14  ;;  %v814_v30 = vsel %vm457_vm0, %v3820_v34, %v644_v17 }
  0xcd   : > { %v739_v18 = vpop.permute.xlu1 %738  ;;  %v737_v19 = vpop.permute.xlu0 %736 }
  0xce   : > { %v4056_v20 = vsel %vm832_vm3, %v815_v29, %v739_v18  ;;  %v4059_v22 = vsel %vm832_vm3, %v814_v30, %v737_v19 }
  0xcf   : > { %3221 = vmatprep.mubr.msk.f32.mxu0 %vm872_vm4, %v4059_v22 }
  0xd0   : > { %3222 = vmatmul.mubr.msk.f32.gmra.mxu0 %vm872_vm4, %v4056_v20 }
  0xd1   : > { %v652_v31 = vpop.permute.xlu1 %651  ;;  %v650_v32 = vpop.permute.xlu0 %649 }
  0xd2   : > { %v818_v33 = vsel %vm457_vm0, %v3830_v35, %v652_v31  ;;  %v817_v34 = vsel %vm457_vm0, %v3832_v36, %v650_v32 }
  0xd5   : > { %v745_v28 = vpop.permute.xlu1 %744  ;;  %v743_v26 = vpop.permute.xlu0 %742 }
  0xd6   : > { %v4070_v46 = vsel %vm832_vm3, %v818_v33, %v745_v28  ;;  %v4073_v50 = vsel %vm832_vm3, %v817_v34, %v743_v26  ;;  %v555_v33 = vld [vmem:[#allocation2 + $0x10] sm:$0x3] }
  0xd7   : > { %3224 = vmatprep.mubr.msk.f32.mxu0 %vm872_vm4, %v4073_v50  ;;  %v1159_v61 = vrot.slane %v4070_v46, 1 }
  0xd8   : > { %3225 = vmatmul.mubr.msk.f32.gmra.mxu0 %vm872_vm4, %v4070_v46 }
  0xd9   : > { %v658_v51 = vpop.permute.xlu1 %657  ;;  %v656_v60 = vpop.permute.xlu0 %655 }
  0xda   : > { %v821_v35 = vsel %vm457_vm0, %v3842_v37, %v658_v51  ;;  %v820_v36 = vsel %vm457_vm0, %v3844_v38, %v656_v60 }
  0xdd   : > { %v751_v62 = vpop.permute.xlu1 %750  ;;  %v749_v1 = vpop.permute.xlu0 %748 }
  0xde   : > { %v4084_v2 = vsel %vm832_vm3, %v821_v35, %v751_v62  ;;  %v4087_v27 = vsel %vm832_vm3, %v820_v36, %v749_v1 }
  0xdf   : > { %3227 = vmatprep.mubr.msk.f32.mxu0 %vm872_vm4, %v4087_v27 }
  0xe0   : > { %3228 = vmatmul.mubr.msk.f32.gmra.mxu0 %vm872_vm4, %v4084_v2 }
  0xe1   : > { %v664_v25 = vpop.permute.xlu1 %663  ;;  %v662_v5 = vpop.permute.xlu0 %661 }
  0xe2   : > { %v823_v37 = vsel %vm457_vm0, %v3863_v41, %v662_v5  ;;  %v824_v9 = vsel %vm457_vm0, %v3861_v40, %v664_v25 }
  0xe5   : > { %v674_v38 = vpop.permute.xlu1 %673  ;;  %v755_v6 = vpop.permute.xlu0 %754 }
  0xe6   : > { %v4096_v8 = vsel %vm832_vm3, %v823_v37, %v755_v6  ;;  %v829_v41 = vsel %vm457_vm0, %v3885_v45, %v674_v38  ;;  %v2973_v45 = vld [vmem:[%s4876_s3 + $0x10] sm:$0xff] }
  0xe7   : > { %3230 = vmatprep.mubr.msk.f32.mxu0 %vm872_vm4, %v4096_v8 }
  0xe9   : > { %v676_v14 = vpop.permute.xlu1 %675  ;;  %v757_v17 = vpop.permute.xlu0 %756 }
  0xea   : > { %v4103_v29 = vsel %vm832_vm3, %v824_v9, %v757_v17  ;;  %v830_v40 = vsel %vm457_vm0, %v3890_v47, %v676_v14  ;;  %v1148_v17 = vrot.slane %v4045_v13, 1 }
  0xeb   : > { %3231 = vmatmul.mubr.msk.f32.gmra.mxu0 %vm872_vm4, %v4103_v29 }
  0xed   : > { %v624_v30 = vpop.permute.xlu1 %623  ;;  %v767_v18 = vpop.permute.xlu0 %766 }
  0xee   : > { %v4110_v19 = vsel %vm832_vm3, %v829_v41, %v767_v18  ;;  %v804_v47 = vsel %vm457_vm0, %v555_v33, %v624_v30  ;;  %v1431_v41 = vrot.slane %v4042_v10, 2  ;;  %v1430_v30 = vrot.slane %v4045_v13, 2 }
  0xef   : > { %3236 = vmatprep.mubr.msk.f32.mxu1 %vm872_vm4, %v4110_v19  ;;  %v1154_v13 = vrot.slane %v4056_v20, 1 }
  0xf1   : > { %v769_v31 = vpop.permute.xlu1 %768  ;;  %v668_v32 = vpop.permute.xlu0 %667 }
  0xf2   : > { %v4117_v34 = vsel %vm832_vm3, %v830_v40, %v769_v31  ;;  %v826_v35 = vsel %vm457_vm0, %v3875_v43, %v668_v32  ;;  %v1153_v31 = vrot.slane %v4059_v22, 1  ;;  %v1436_v32 = vrot.slane %v4056_v20, 2 }
  0xf3   : > { %3237 = vmatmul.mubr.msk.f32.vlgmr.msra.gmra.mxu1 %vm872_vm4, %v4117_v34 }
  0xf4   : > { %3243 = vmatprep.mubr.msk.f32.mxu1 %vm872_vm4, %v3984_v15  ;;  %3240 = vmatpush3.msk.msra.mxu1 %vm933_vm2, %v3895_v48 }
  0xf5   : > { %v717_v28 = vpop.permute.xlu1 %716  ;;  %v670_v26 = vpop.permute.xlu0 %669  ;;  %3241 = vmatprep.subr.mxu1 %v2973_v45 }
  0xf6   : > { %v835_v51 = vsel %vm832_vm3, %v804_v47, %v717_v28  ;;  %3242 = vmatpush3.msra.mxu1 %v2973_v45  ;;  %v827_v36 = vsel %vm457_vm0, %v3873_v42, %v670_v26  ;;  %v1158_v28 = vrot.slane %v4073_v50, 1 }
  0xf7   : > { %v1136_v60 = vrot.slane %v835_v51, 1  ;;  %v1418_v5 = vrot.slane %v835_v51, 2  ;;  %v1441_v51 = vrot.slane %v4070_v46, 2 }
  0xf9   : > { %v763_v62 = vpop.permute.xlu1 %762  ;;  %v761_v15 = vpop.permute.xlu0 %760  ;;  %v1137_v48 = vsel %vm1132_vm5, %v1134_v11, %v1136_v60  ;;  %v1419_v37 = vsel %vm1414_vm6, %v1416_v12, %v1418_v5  ;;  %v1440_v60 = vrot.slane %v4073_v50, 2 }
  0xfa   : > { %v4138_v1 = vsel %vm832_vm3, %v827_v36, %v763_v62  ;;  %v4141_v25 = vsel %vm832_vm3, %v826_v35, %v761_v15  ;;  %3244 = vmatmul.mubr.msk.f32.vlgmr.msra.gmra.mxu1 %vm872_vm4, %v1137_v48  ;;  %v1155_v36 = vsel %vm1132_vm5, %v1153_v31, %v1154_v13 }
  0xfb   : > { %3233 = vmatprep.mubr.msk.f32.mxu0 %vm872_vm4, %v4141_v25  ;;  %3246 = vmatprep.mubr.msk.f32.mxu1 %vm872_vm4, %v4007_v39  ;;  %v1149_v39 = vrot.slane %v4042_v10, 1  ;;  %v1173_v31 = vrot.slane %v4141_v25, 1 }
  0xfc   : > { %3234 = vmatmul.mubr.msk.f32.gmra.mxu0 %vm872_vm4, %v4138_v1 }
  0xfd   : > { %v630_v42 = vpop.permute.xlu0 %629  ;;  %3277 = vmatprep.mubr.msk.f32.mxu0 %vm872_vm4, %v3989_v16  ;;  %v723_v43 = vpop.permute.xlu1 %722  ;;  %v1150_v10 = vsel %vm1132_vm5, %v1148_v17, %v1149_v39 }
  0xfe   : > { %v807_v11 = vsel %vm457_vm0, %v3902_v49, %v630_v42  ;;  %v1160_v42 = vsel %vm1132_vm5, %v1158_v28, %v1159_v61 }
  0xff   : > { %v838_v38 = vsel %vm832_vm3, %v807_v11, %v723_v43  ;;  %v1164_v11 = vrot.slane %v4084_v2, 1 }
 0x100   : > { %v1141_v6 = vrot.slane %v838_v38, 1  ;;  %v1423_v9 = vrot.slane %v838_v38, 2  ;;  %3278 = vmatmul.mubr.msk.f32.vlgmr.msra.gmra.mxu0 %vm872_vm4, %v1419_v37  ;;  %v1163_v37 = vrot.slane %v4087_v27, 1 }
 0x101   : > { %v636_v14 = vpop.permute.xlu0 %635  ;;  %3280 = vmatprep.mubr.msk.f32.mxu0 %vm872_vm4, %v4012_v44  ;;  %v729_v16 = vpop.permute.xlu1 %728 }
 0x102   : > { %v810_v49 = vsel %vm457_vm0, %v3910_v52, %v636_v14  ;;  %v1142_v7 = vsel %vm1132_vm5, %v1139_v23, %v1141_v6  ;;  %v1424_v12 = vsel %vm1414_vm6, %v1421_v24, %v1423_v9  ;;  %v1442_v6 = vsel %vm1414_vm6, %v1440_v60, %v1441_v51 }
 0x103   : > { %v841_v44 = vsel %vm832_vm3, %v810_v49, %v729_v16  ;;  %3247 = vmatmul.mubr.msk.f32.gmra.mxu1 %vm872_vm4, %v1142_v7  ;;  %v1446_v9 = vrot.slane %v4084_v2, 2  ;;  %v1169_v49 = vrot.slane %v4103_v29, 1 }
 0x104   : > { %v1146_v18 = vrot.slane %v841_v44, 1  ;;  %v1428_v40 = vrot.slane %v841_v44, 2  ;;  %3249 = vmatprep.mubr.msk.f32.mxu1 %vm872_vm4, %v4030_v3  ;;  %3281 = vmatmul.mubr.msk.f32.gmra.mxu0 %vm872_vm4, %v1424_v12  ;;  %v1168_v44 = vrot.slane %v4096_v8, 1 }
 0x105   : > { %v642_v52 = vpop.permute.xlu0 %641  ;;  %3283 = vmatprep.mubr.msk.f32.mxu0 %vm872_vm4, %v4035_v4  ;;  %v735_v21 = vpop.permute.xlu1 %734 }
 0x106   : > { %v813_v23 = vsel %vm457_vm0, %v3918_v53, %v642_v52  ;;  %v1147_v24 = vsel %vm1132_vm5, %v1144_v63, %v1146_v18  ;;  %v1429_v3 = vsel %vm1414_vm6, %v1426_v0, %v1428_v40  ;;  %v1432_v53 = vsel %vm1414_vm6, %v1430_v30, %v1431_v41 }
 0x107   : > { %v844_v4 = vsel %vm832_vm3, %v813_v23, %v735_v21  ;;  %3250 = vmatmul.mubr.msk.f32.gmra.mxu1 %vm872_vm4, %v1147_v24  ;;  %v1435_v63 = vrot.slane %v4059_v22, 2  ;;  %v1165_v30 = vsel %vm1132_vm5, %v1163_v37, %v1164_v11  ;;  %v1450_v52 = vrot.slane %v4096_v8, 2 }
 0x108   : > { %v1151_v33 = vrot.slane %v844_v4, 1  ;;  %v1433_v45 = vrot.slane %v844_v4, 2  ;;  %3252 = vmatprep.mubr.msk.f32.mxu1 %vm872_vm4, %v1150_v10  ;;  %3284 = vmatmul.mubr.msk.f32.gmra.mxu0 %vm872_vm4, %v1429_v3  ;;  %v1170_v10 = vsel %vm1132_vm5, %v1168_v44, %v1169_v49 }
 0x109   : > { %v648_v0 = vpop.permute.xlu0 %647  ;;  %3286 = vmatprep.mubr.msk.f32.mxu0 %vm872_vm4, %v1432_v53  ;;  %v741_v47 = vpop.permute.xlu1 %740  ;;  %v1456_v53 = vrot.slane %v4138_v1, 2 }
 0x10a   : > { %v816_v26 = vsel %vm457_vm0, %v3924_v54, %v648_v0  ;;  %v1152_v20 = vsel %vm1132_vm5, %v1149_v39, %v1151_v33  ;;  %v1434_v22 = vsel %vm1414_vm6, %v1431_v41, %v1433_v45  ;;  %v1437_v54 = vsel %vm1414_vm6, %v1435_v63, %v1436_v32 }
 0x10b   : > { %v847_v35 = vsel %vm832_vm3, %v816_v26, %v741_v47  ;;  %3253 = vmatmul.mubr.msk.f32.gmra.mxu1 %vm872_vm4, %v1152_v20  ;;  %v1461_v26 = vrot.slane %v4117_v34, 2 }
 0x10c   : > { %v1156_v62 = vrot.slane %v847_v35, 1  ;;  %v1438_v15 = vrot.slane %v847_v35, 2  ;;  %3255 = vmatprep.mubr.msk.f32.mxu1 %vm872_vm4, %v1155_v36  ;;  %3287 = vmatmul.mubr.msk.f32.gmra.mxu0 %vm872_vm4, %v1434_v22  ;;  %v1460_v36 = vrot.slane %v4110_v19, 2 }
 0x10d   : > { %v654_v48 = vpop.permute.xlu0 %653  ;;  %3289 = vmatprep.mubr.msk.f32.mxu0 %vm872_vm4, %v1437_v54  ;;  %v747_v46 = vpop.permute.xlu1 %746 }
 0x10e   : > { %v819_v50 = vsel %vm457_vm0, %v3930_v55, %v654_v48  ;;  %v1157_v5 = vsel %vm1132_vm5, %v1154_v13, %v1156_v62  ;;  %v1439_v43 = vsel %vm1414_vm6, %v1436_v32, %v1438_v15  ;;  %v1445_v55 = vrot.slane %v4087_v27, 2 }
 0x10f   : > { %v850_v38 = vsel %vm832_vm3, %v819_v50, %v747_v46  ;;  %3256 = vmatmul.mubr.msk.f32.gmra.mxu1 %vm872_vm4, %v1157_v5  ;;  %v1451_v27 = vrot.slane %v4103_v29, 2  ;;  %v1174_v13 = vrot.slane %v4138_v1, 1  ;;  %v1179_v1 = vrot.slane %v4117_v34, 1 }
 0x110   : > { %v1161_v39 = vrot.slane %v850_v38, 1  ;;  %v1443_v14 = vrot.slane %v850_v38, 2  ;;  %3258 = vmatprep.mubr.msk.f32.mxu1 %vm872_vm4, %v1160_v42  ;;  %3290 = vmatmul.mubr.msk.f32.gmra.mxu0 %vm872_vm4, %v1439_v43 }
 0x111   : > { %v660_v16 = vpop.permute.xlu0 %659  ;;  %3292 = vmatprep.mubr.msk.f32.mxu0 %vm872_vm4, %v1442_v6  ;;  %v753_v17 = vpop.permute.xlu1 %752  ;;  %v1452_v8 = vsel %vm1414_vm6, %v1450_v52, %v1451_v27  ;;  %v1175_v28 = vsel %vm1132_vm5, %v1173_v31, %v1174_v13 }
 0x112   : > { %v822_v7 = vsel %vm457_vm0, %v3936_v56, %v660_v16  ;;  %v1162_v12 = vsel %vm1132_vm5, %v1159_v61, %v1161_v39  ;;  %v1444_v2 = vsel %vm1414_vm6, %v1441_v51, %v1443_v14  ;;  %v1447_v56 = vsel %vm1414_vm6, %v1445_v55, %v1446_v9 }
 0x113   : > { %v853_v41 = vsel %vm832_vm3, %v822_v7, %v753_v17  ;;  %3259 = vmatmul.mubr.msk.f32.gmra.mxu1 %vm872_vm4, %v1162_v12  ;;  %v1178_v51 = vrot.slane %v4110_v19, 1  ;;  %v1462_v19 = vsel %vm1414_vm6, %v1460_v36, %v1461_v26 }
 0x114   : > { %v1166_v18 = vrot.slane %v853_v41, 1  ;;  %v1448_v40 = vrot.slane %v853_v41, 2  ;;  %3261 = vmatprep.mubr.msk.f32.mxu1 %vm872_vm4, %v1165_v30  ;;  %3293 = vmatmul.mubr.msk.f32.gmra.mxu0 %vm872_vm4, %v1444_v2  ;;  %v4306_v41 = vld [vmem:[%s4877_s4] ss:$0 sm:$0xff] }
 0x115   : > { %v666_v21 = vpop.permute.xlu0 %665  ;;  %3295 = vmatprep.mubr.msk.f32.mxu0 %vm872_vm4, %v1447_v56  ;;  %v759_v29 = vpop.permute.xlu1 %758  ;;  %v1180_v48 = vsel %vm1132_vm5, %v1178_v51, %v1179_v1 }
 0x116   : > { %v825_v23 = vsel %vm457_vm0, %v3942_v57, %v666_v21  ;;  %v1167_v24 = vsel %vm1132_vm5, %v1164_v11, %v1166_v18  ;;  %v1449_v3 = vsel %vm1414_vm6, %v1446_v9, %v1448_v40  ;;  %v1455_v57 = vrot.slane %v4141_v25, 2 }
 0x117   : > { %v856_v4 = vsel %vm832_vm3, %v825_v23, %v759_v29  ;;  %3262 = vmatmul.mubr.msk.f32.gmra.mxu1 %vm872_vm4, %v1167_v24 }
 0x118   : > { %v1171_v32 = vrot.slane %v856_v4, 1  ;;  %v1453_v63 = vrot.slane %v856_v4, 2  ;;  %3264 = vmatprep.mubr.msk.f32.mxu1 %vm872_vm4, %v1170_v10  ;;  %3296 = vmatmul.mubr.msk.f32.gmra.mxu0 %vm872_vm4, %v1449_v3 }
 0x119   : > { %v672_v33 = vpop.permute.xlu0 %671  ;;  %3298 = vmatprep.mubr.msk.f32.mxu0 %vm872_vm4, %v1452_v8  ;;  %v765_v45 = vpop.permute.xlu1 %764 }
 0x11a   : > { %v828_v61 = vsel %vm457_vm0, %v3948_v58, %v672_v33  ;;  %v1172_v0 = vsel %vm1132_vm5, %v1169_v49, %v1171_v32  ;;  %v1454_v47 = vsel %vm1414_vm6, %v1451_v27, %v1453_v63  ;;  %v1457_v58 = vsel %vm1414_vm6, %v1455_v57, %v1456_v53 }
 0x11b   : > { %v859_v25 = vsel %vm832_vm3, %v828_v61, %v765_v45  ;;  %3265 = vmatmul.mubr.msk.f32.gmra.mxu1 %vm872_vm4, %v1172_v0 }
 0x11c   : > { %v1176_v20 = vrot.slane %v859_v25, 1  ;;  %v1458_v22 = vrot.slane %v859_v25, 2  ;;  %3267 = vmatprep.mubr.msk.f32.mxu1 %vm872_vm4, %v1175_v28  ;;  %3299 = vmatmul.mubr.msk.f32.gmra.mxu0 %vm872_vm4, %v1454_v47 }
 0x11d   : > { %v678_v60 = vpop.permute.xlu0 %677  ;;  %3301 = vmatprep.mubr.msk.f32.mxu0 %vm872_vm4, %v1457_v58  ;;  %v771_v35 = vpop.permute.xlu1 %770 }
 0x11e   : > { %v831_v62 = vsel %vm457_vm0, %v3954_v59, %v678_v60  ;;  %v1177_v34 = vsel %vm1132_vm5, %v1174_v13, %v1176_v20  ;;  %v1459_v15 = vsel %vm1414_vm6, %v1456_v53, %v1458_v22 }
 0x11f   : > { %v862_v54 = vsel %vm832_vm3, %v831_v62, %v771_v35  ;;  %3268 = vmatmul.mubr.msk.f32.gmra.mxu1 %vm872_vm4, %v1177_v34 }
 0x120   : > { %v1181_v46 = vrot.slane %v862_v54, 1  ;;  %v1463_v50 = vrot.slane %v862_v54, 2  ;;  %3270 = vmatprep.mubr.msk.f32.mxu1 %vm872_vm4, %v1180_v48  ;;  %3302 = vmatmul.mubr.msk.f32.gmra.mxu0 %vm872_vm4, %v1459_v15 }
 0x121   : > { %3304 = vmatprep.mubr.msk.f32.mxu0 %vm872_vm4, %v1462_v19 }
 0x122   : > { %v1182_v59 = vsel %vm1132_vm5, %v1179_v1, %v1181_v46  ;;  %v1464_v5 = vsel %vm1414_vm6, %v1461_v26, %v1463_v50 }
 0x123   : > { %3271 = vmatmul.mubr.msk.f32.gmra.mxu1 %vm872_vm4, %v1182_v59 }
 0x124   : > { %3305 = vmatmul.mubr.msk.f32.gmra.mxu0 %vm872_vm4, %v1464_v5 }
 0x170   : > { %v3211_v42 = vpop.f32.mrf.mxu0 }
 0x171   : > { %v1103_v40 = vadd.f32 %v3211_v42, %v4306_v41 }
 0x172   : > { %v1003_v43 = vpop.f32.mrf.mxu0 }
 0x173   : > { %v1102_v21 = vadd.f32 %v4306_v41, %v1003_v43 }
 0x178   : > { %v3214_v11 = vpop.f32.mrf.mxu0 }
 0x179   : > { %v1105_v3 = vadd.f32 %v3214_v11, %v4306_v41 }
 0x17a   : > { %v1013_v37 = vpop.f32.mrf.mxu0 }
 0x17b   : > { %v1104_v53 = vadd.f32 %v4306_v41, %v1013_v37 }
 0x180   : > { %v3217_v38 = vpop.f32.mrf.mxu0 }
 0x181   : > { %v1107_v45 = vadd.f32 %v3217_v38, %v4306_v41 }
 0x182   : > { %v1023_v6 = vpop.f32.mrf.mxu0 }
 0x183   : > { %v1106_v25 = vadd.f32 %v4306_v41, %v1023_v6 }
 0x188   : > { %v3220_v9 = vpop.f32.mrf.mxu0 }
 0x189   : > { %v1109_v51 = vadd.f32 %v3220_v9, %v4306_v41 }
 0x18a   : > { %v1033_v55 = vpop.f32.mrf.mxu0 }
 0x18b   : > { %v1108_v15 = vadd.f32 %v4306_v41, %v1033_v55 }
 0x190   : > { %v3223_v39 = vpop.f32.mrf.mxu0 }
 0x191   : > { %v1111_v59 = vadd.f32 %v3223_v39, %v4306_v41 }
 0x192   : > { %v1043_v14 = vpop.f32.mrf.mxu0 }
 0x193   : > { %v1110_v38 = vadd.f32 %v4306_v41, %v1043_v14 }
 0x198   : > { %v4289_v16 = vpop.f32.mrf.mxu0 }
 0x19a   : > { %v4291_v17 = vpop.f32.mrf.mxu0 }
 0x19b   : > { %v1112_v14 = vadd.f32 %v4306_v41, %v4291_v17 }
 0x1a0   : > { %v4293_v49 = vpop.f32.mrf.mxu0 }
 0x1a2   : > { %v4295_v7 = vpop.f32.mrf.mxu0 }
 0x1a3   : > { %v1114_v17 = vadd.f32 %v4306_v41, %v4295_v7 }
 0x1ab   : > { %v4299_v2 = vpop.f32.mrf.mxu0 }
 0x1ad   : > { %v4308_v30 = vpop.f32.mrf.mxu0 }
 0x1ae   : > { %v1116_v7 = vadd.f32 %v4306_v41, %v4308_v30 }
 0x1b3   : > { %v4297_v12 = vpop.f32.mrf.mxu1 }
 0x1b5   : > { %v4301_v27 = vpop.f32.mrf.mxu1 }
 0x1ba   : > { %v3245_v44 = vpop.f32.mrf.mxu1 }
 0x1bb   : > { %v1395_v29 = vadd.f32 %v3245_v44, %v1103_v40 }
 0x1bc   : > { %v4310_v18 = vpop.f32.mrf.mxu0  ;;  %v1295_v56 = vpop.f32.mrf.mxu1 }
 0x1bd   : > { %v1394_v24 = vadd.f32 %v1295_v56, %v1102_v21  ;;  %v1113_v56 = vadd.f32 %v4289_v16, %v4306_v41  ;;  %v1115_v16 = vadd.f32 %v4293_v49, %v4306_v41  ;;  %v1117_v49 = vadd.f32 %v4299_v2, %v4306_v41 }
 0x1be   : > { %v4313_v52 = vpop.f32.mrf.mxu0  ;;  %v1119_v2 = vadd.f32 %v4310_v18, %v4306_v41  ;;  %v1121_v18 = vadd.f32 %v4297_v12, %v4306_v41 }
 0x1bf   : > { %v1118_v30 = vadd.f32 %v4306_v41, %v4313_v52  ;;  %v1120_v52 = vadd.f32 %v4306_v41, %v4301_v27 }
 0x1c0   : > { %v3279_v23 = vpop.f32.mrf.mxu0 }
 0x1c1   : > { %v4316_v10 = vadd.f32 %v3279_v23, %v1395_v29 }
 0x1c2   : > { %v1577_v13 = vpop.f32.mrf.mxu0 }
 0x1c3   : > { %v1697_v31 = vmax.f32 %v4316_v10, 0.0  ;;  %v4320_v4 = vadd.f32 %v1577_v13, %v1394_v24  ;;  %v3248_v8 = vpop.f32.mrf.mxu1 }
 0x1c4   : > { %v1397_v57 = vadd.f32 %v3248_v8, %v1105_v3  ;;  %v3282_v32 = vpop.f32.mrf.mxu0 }
 0x1c5   : > { %v1696_v63 = vmax.f32 %v4320_v4, 0.0  ;;  %v1305_v33 = vpop.f32.mrf.mxu1 }
 0x1c6   : > { %v1679_v61 = vadd.f32 %v3282_v32, %v1397_v57  ;;  %v1396_v0 = vadd.f32 %v1305_v33, %v1104_v53  ;;  %v1587_v47 = vpop.f32.mrf.mxu0 }
 0x1c7   : > { %v3251_v1 = vpop.f32.mrf.mxu1 }
 0x1c8   : > { %v1699_v28 = vmax.f32 %v1679_v61, 0.0  ;;  %v1678_v26 = vadd.f32 %v1587_v47, %v1396_v0  ;;  %v1399_v20 = vadd.f32 %v3251_v1, %v1107_v45  ;;  %v3285_v22 = vpop.f32.mrf.mxu0 }
 0x1c9   : > { %v1315_v58 = vpop.f32.mrf.mxu1 }
 0x1ca   : > { %1748 = vst.msk [vmem:[#allocation3 + $0x21] sm:$0xff] %vm457_vm0, %v1699_v28  ;;  %v1698_v60 = vmax.f32 %v1678_v26, 0.0  ;;  %v1681_v35 = vadd.f32 %v3285_v22, %v1399_v20  ;;  %v1398_v36 = vadd.f32 %v1315_v58, %v1106_v25  ;;  %v1597_v62 = vpop.f32.mrf.mxu0 }
 0x1cb   : > { %v3254_v34 = vpop.f32.mrf.mxu1 }
 0x1cc   : > { %1747 = vst.msk [vmem:[#allocation3 + $0x19] sm:$0xff] %vm457_vm0, %v1698_v60  ;;  %v1701_v54 = vmax.f32 %v1681_v35, 0.0  ;;  %v1680_v48 = vadd.f32 %v1597_v62, %v1398_v36  ;;  %v1401_v46 = vadd.f32 %v3254_v34, %v1109_v51  ;;  %v3288_v50 = vpop.f32.mrf.mxu0 }
 0x1cd   : > { %v1325_v19 = vpop.f32.mrf.mxu1 }
 0x1ce   : > { %1750 = vst.msk [vmem:[#allocation3 + $0x39] sm:$0xff] %vm457_vm0, %v1701_v54  ;;  %v1700_v5 = vmax.f32 %v1680_v48, 0.0  ;;  %v1683_v42 = vadd.f32 %v3288_v50, %v1401_v46  ;;  %v1400_v43 = vadd.f32 %v1325_v19, %v1108_v15  ;;  %v1607_v11 = vpop.f32.mrf.mxu0 }
 0x1cf   : > { %v3257_v37 = vpop.f32.mrf.mxu1 }
 0x1d0   : > { %1749 = vst.msk [vmem:[#allocation3 + $0x31] sm:$0xff] %vm457_vm0, %v1700_v5  ;;  %v1703_v6 = vmax.f32 %v1683_v42, 0.0  ;;  %v1682_v9 = vadd.f32 %v1607_v11, %v1400_v43  ;;  %v1403_v55 = vadd.f32 %v3257_v37, %v1111_v59  ;;  %v3291_v44 = vpop.f32.mrf.mxu0 }
 0x1d1   : > { %v1335_v40 = vpop.f32.mrf.mxu1 }
 0x1d2   : > { %1752 = vst.msk [vmem:[#allocation3 + $0x51] sm:$0xff] %vm457_vm0, %v1703_v6  ;;  %v1702_v39 = vmax.f32 %v1682_v9, 0.0  ;;  %v1685_v21 = vadd.f32 %v3291_v44, %v1403_v55  ;;  %v1402_v29 = vadd.f32 %v1335_v40, %v1110_v38  ;;  %v1617_v23 = vpop.f32.mrf.mxu0 }
 0x1d3   : > { %v3260_v24 = vpop.f32.mrf.mxu1 }
 0x1d4   : > { %1751 = vst.msk [vmem:[#allocation3 + $0x49] sm:$0xff] %vm457_vm0, %v1702_v39  ;;  %v1705_v3 = vmax.f32 %v1685_v21, 0.0  ;;  %v1684_v13 = vadd.f32 %v1617_v23, %v1402_v29  ;;  %v1405_v8 = vadd.f32 %v3260_v24, %v1113_v56  ;;  %v3294_v53 = vpop.f32.mrf.mxu0 }
 0x1d5   : > { %v1345_v57 = vpop.f32.mrf.mxu1 }
 0x1d6   : > { %1754 = vst.msk [vmem:[#allocation3 + $0x69] sm:$0xff] %vm457_vm0, %v1705_v3  ;;  %v1704_v32 = vmax.f32 %v1684_v13, 0.0  ;;  %v1687_v33 = vadd.f32 %v3294_v53, %v1405_v8  ;;  %v1404_v45 = vadd.f32 %v1345_v57, %v1112_v14  ;;  %v1627_v61 = vpop.f32.mrf.mxu0 }
 0x1d7   : > { %v3263_v0 = vpop.f32.mrf.mxu1 }
 0x1d8   : > { %1753 = vst.msk [vmem:[#allocation3 + $0x61] sm:$0xff] %vm457_vm0, %v1704_v32  ;;  %v1707_v47 = vmax.f32 %v1687_v33, 0.0  ;;  %v1686_v1 = vadd.f32 %v1627_v61, %v1404_v45  ;;  %v1407_v25 = vadd.f32 %v3263_v0, %v1115_v16  ;;  %v3297_v28 = vpop.f32.mrf.mxu0 }
 0x1d9   : > { %v1355_v26 = vpop.f32.mrf.mxu1 }
 0x1da   : > { %1756 = vst.msk [vmem:[#allocation3 + $0x81] sm:$0xff] %vm457_vm0, %v1707_v47  ;;  %v1706_v20 = vmax.f32 %v1686_v1, 0.0  ;;  %v1689_v22 = vadd.f32 %v3297_v28, %v1407_v25  ;;  %v1406_v58 = vadd.f32 %v1355_v26, %v1114_v17  ;;  %v1637_v51 = vpop.f32.mrf.mxu0 }
 0x1db   : > { %v3266_v60 = vpop.f32.mrf.mxu1 }
 0x1dc   : > { %1755 = vst.msk [vmem:[#allocation3 + $0x79] sm:$0xff] %vm457_vm0, %v1706_v20  ;;  %v1709_v35 = vmax.f32 %v1689_v22, 0.0  ;;  %v1688_v36 = vadd.f32 %v1637_v51, %v1406_v58  ;;  %v1409_v62 = vadd.f32 %v3266_v60, %v1117_v49  ;;  %v3300_v34 = vpop.f32.mrf.mxu0 }
 0x1dd   : > { %v1365_v15 = vpop.f32.mrf.mxu1 }
 0x1de   : > { %1758 = vst.msk [vmem:[#allocation3 + $0x99] sm:$0xff] %vm457_vm0, %v1709_v35  ;;  %v1708_v54 = vmax.f32 %v1688_v36, 0.0  ;;  %v1691_v48 = vadd.f32 %v3300_v34, %v1409_v62  ;;  %v1408_v46 = vadd.f32 %v1365_v15, %v1116_v7  ;;  %v1647_v50 = vpop.f32.mrf.mxu0 }
 0x1df   : > { %v3269_v19 = vpop.f32.mrf.mxu1 }
 0x1e0   : > { %1757 = vst.msk [vmem:[#allocation3 + $0x91] sm:$0xff] %vm457_vm0, %v1708_v54  ;;  %v1711_v59 = vmax.f32 %v1691_v48, 0.0  ;;  %v1690_v5 = vadd.f32 %v1647_v50, %v1408_v46  ;;  %v1411_v42 = vadd.f32 %v3269_v19, %v1119_v2  ;;  %v3303_v43 = vpop.f32.mrf.mxu0 }
 0x1e1   : > { %v1375_v11 = vpop.f32.mrf.mxu1 }
 0x1e2   : > { %1760 = vst.msk [vmem:[#allocation3 + $0xb1] sm:$0xff] %vm457_vm0, %v1711_v59  ;;  %v1710_v37 = vmax.f32 %v1690_v5, 0.0  ;;  %v1693_v38 = vadd.f32 %v3303_v43, %v1411_v42  ;;  %v1410_v6 = vadd.f32 %v1375_v11, %v1118_v30  ;;  %v1657_v9 = vpop.f32.mrf.mxu0 }
 0x1e3   : > { %v3272_v55 = vpop.f32.mrf.mxu1 }
 0x1e4   : > { %1759 = vst.msk [vmem:[#allocation3 + $0xa9] sm:$0xff] %vm457_vm0, %v1710_v37  ;;  %v1713_v44 = vmax.f32 %v1693_v38, 0.0  ;;  %v1692_v40 = vadd.f32 %v1657_v9, %v1410_v6  ;;  %v1413_v56 = vadd.f32 %v3272_v55, %v1121_v18  ;;  %v3306_v39 = vpop.f32.mrf.mxu0 }
 0x1e5   : > { %v1385_v21 = vpop.f32.mrf.mxu1 }
 0x1e6   : > { %1762 = vst.msk [vmem:[#allocation3 + $0xc9] sm:$0xff] %vm457_vm0, %v1713_v44  ;;  %v1712_v12 = vmax.f32 %v1692_v40, 0.0  ;;  %v1695_v29 = vadd.f32 %v3306_v39, %v1413_v56  ;;  %v1412_v23 = vadd.f32 %v1385_v21, %v1120_v52  ;;  %v1667_v24 = vpop.f32.mrf.mxu0  ;;  %1765 = sbr.rel (%p2949_p11) target bundleno = 492 (0x1ec), region = 60 }
 0x1e8   : > { %1761 = vst.msk [vmem:[#allocation3 + $0xc1] sm:$0xff] %vm457_vm0, %v1712_v12  ;;  %v1715_v14 = vmax.f32 %v1695_v29, 0.0  ;;  %v1694_v3 = vadd.f32 %v1667_v24, %v1412_v23 }
 0x1ea   : > { %v1714_v13 = vmax.f32 %v1694_v3, 0.0 }
 0x1eb   : > { %1766 = vst.msk [vmem:[#allocation3 + $0x1] sm:$0xff] %vm457_vm0, %v1696_v63  ;;  %1767 = vst.msk [vmem:[#allocation3 + $0x9] sm:$0xff] %vm457_vm0, %v1697_v31 }
 0x1ec PF: > { %1770 = sbr.rel (%p2950_p12) target bundleno = 498 (0x1f2), region = 64 }
 0x1f1   : > { %1772 = vst.msk [vmem:[#allocation3 + $0xd9] sm:$0xff] %vm457_vm0, %v1714_v13  ;;  %1773 = vst.msk [vmem:[#allocation3 + $0xe1] sm:$0xff] %vm457_vm0, %v1715_v14 }
 0x1f2 PF: > { %v4378_v27 = vld [vmem:[#allocation3 + $0x30] sm:$0xff]  ;;  %v4380_v41 = vld [vmem:[#allocation3 + $0x18] sm:$0xff]  ;;  %v4388_v31 = vld [vmem:[#allocation3 + $0x20] sm:$0xff] }
 0x1f3   : > { %1903 = vrot.lane.b32.xlu1 %v4378_v27, %s3479_s10  ;;  %1828 = vrot.lane.b32.xlu0 %v4380_v41, %s3480_s22  ;;  %v4386_v10 = vld [vmem:[#allocation3 + $0x38] sm:$0xff]  ;;  %v2031_v4 = vld [vmem:[%s4878_s5 + $0x8] sm:$0xf]  ;;  %v4401_v63 = vld [vmem:[#allocation3 + $0x50] sm:$0xff] }
 0x1f4   : > { %v4403_v8 = vld [vmem:[#allocation3 + $0x48] sm:$0xff]  ;;  %3307 = vmatprep.subr.msk.mxu1 %vm933_vm2, %v2031_v4  ;;  %v2030_v53 = vld [vmem:[%s4878_s5] sm:$0xff]  ;;  %v4433_v32 = vld [vmem:[%s4878_s5 + $0x18] sm:$0xf] }
 0x1f5   : > { %3308 = vmatpush3.msk.msra.mxu1 %vm933_vm2, %v2031_v4  ;;  %v4418_v57 = vld [vmem:[#allocation3 + $0x68] sm:$0xff]  ;;  %v4420_v16 = vld [vmem:[#allocation3 + $0x60] sm:$0xff]  ;;  %v4437_v45 = vld [vmem:[#allocation3 + $0x78] sm:$0xff] }
 0x1f6   : > { %3309 = vmatprep.subr.mxu1 %v2030_v53  ;;  %v4435_v33 = vld [vmem:[#allocation3 + $0x80] sm:$0xff]  ;;  %v4449_v61 = vld [vmem:[#allocation3 + $0x98] sm:$0xff]  ;;  %v4451_v0 = vld [vmem:[#allocation3 + $0x90] sm:$0xff] }
 0x1f7   : > { %1905 = vrot.lane.b32.xlu1 %v4386_v10, %s3479_s10  ;;  %1830 = vrot.lane.b32.xlu0 %v4388_v31, %s3480_s22  ;;  %v4461_v17 = vld [vmem:[#allocation3 + $0xb0] sm:$0xff]  ;;  %v4463_v47 = vld [vmem:[#allocation3 + $0xa8] sm:$0xff]  ;;  %v1798_v25 = vld [vmem:[#allocation3 + $0xc0] sm:$0xff] }
 0x1f8   : > { %3310 = vmatpush3.msra.mxu1 %v2030_v53  ;;  %v1799_v1 = vld [vmem:[#allocation3 + $0xc8] sm:$0xff]  ;;  %v3058_v26 = vld [vmem:[%s4878_s5 + $0x20] sm:$0xff]  ;;  %v1801_v20 = vld [vmem:[#allocation3 + $0xd8] sm:$0xff] }
 0x1f9   : > { %3335 = vmatprep.subr.msk.mxu1 %vm933_vm2, %v4433_v32  ;;  %v3059_v28 = vld [vmem:[%s4878_s5 + $0x28] sm:$0xf]  ;;  %v4490_v22 = vld [vmem:[#allocation3 + $0x40] sm:$0x3]  ;;  %v4495_v51 = vld [vmem:[#allocation3 + $0x58] sm:$0x3] }
 0x1fa   : > { %3363 = vmatprep.subr.msk.mxu0 %vm933_vm2, %v3059_v28  ;;  %v4485_v49 = vld [vmem:[#allocation3 + $0x28] sm:$0x3]  ;;  %v1802_v58 = vld [vmem:[#allocation3 + $0xe0] sm:$0xff]  ;;  %v4501_v60 = vld [vmem:[#allocation3 + $0x70] sm:$0x3] }
 0x1fb   : > { %1836 = vrot.lane.b32.xlu1 %v4386_v10, %s3480_s22  ;;  %1834 = vrot.lane.b32.xlu0 %v4378_v27, %s3480_s22  ;;  %v4507_v7 = vld [vmem:[#allocation3 + $0x88] sm:$0x3]  ;;  %v4513_v35 = vld [vmem:[#allocation3 + $0xa0] sm:$0x3]  ;;  %v4519_v36 = vld [vmem:[#allocation3 + $0xb8] sm:$0x3] }
 0x1fc   : > { %3364 = vmatpush3.msk.msra.mxu0 %vm933_vm2, %v3059_v28  ;;  %v1800_v62 = vld [vmem:[#allocation3 + $0xd0] sm:$0x3]  ;;  %v1803_v34 = vld [vmem:[#allocation3 + $0xe8] sm:$0x3]  ;;  %v1774_v15 = vld [vmem:[#allocation3] sm:$0xff] }
 0x1fd   : > { %3365 = vmatprep.subr.mxu0 %v3058_v26  ;;  %v1775_v50 = vld [vmem:[#allocation3 + $0x8] sm:$0xff]  ;;  %v3039_v42 = vld [vmem:[%s4878_s5 + $0x10] sm:$0xff] }
 0x1fe   : > { %3366 = vmatpush3.msra.mxu0 %v3058_v26 }
 0x1ff   : > { %1911 = vrot.lane.b32.xlu1 %v4401_v63, %s3479_s10  ;;  %1909 = vrot.lane.b32.xlu0 %v4403_v8, %s3479_s10 }
 0x203   : > { %1842 = vrot.lane.b32.xlu1 %v4401_v63, %s3480_s22  ;;  %1840 = vrot.lane.b32.xlu0 %v4403_v8, %s3480_s22 }
 0x207   : > { %1917 = vrot.lane.b32.xlu1 %v4418_v57, %s3479_s10  ;;  %1915 = vrot.lane.b32.xlu0 %v4420_v16, %s3479_s10 }
 0x20b   : > { %1848 = vrot.lane.b32.xlu1 %v4418_v57, %s3480_s22  ;;  %1846 = vrot.lane.b32.xlu0 %v4420_v16, %s3480_s22 }
 0x20f   : > { %1923 = vrot.lane.b32.xlu1 %v4435_v33, %s3479_s10  ;;  %1921 = vrot.lane.b32.xlu0 %v4437_v45, %s3479_s10 }
 0x213   : > { %1854 = vrot.lane.b32.xlu1 %v4435_v33, %s3480_s22  ;;  %1852 = vrot.lane.b32.xlu0 %v4437_v45, %s3480_s22 }
 0x217   : > { %1929 = vrot.lane.b32.xlu1 %v4449_v61, %s3479_s10  ;;  %1927 = vrot.lane.b32.xlu0 %v4451_v0, %s3479_s10 }
 0x21b   : > { %1860 = vrot.lane.b32.xlu1 %v4449_v61, %s3480_s22  ;;  %1858 = vrot.lane.b32.xlu0 %v4451_v0, %s3480_s22 }
 0x21f   : > { %1935 = vrot.lane.b32.xlu1 %v4461_v17, %s3479_s10  ;;  %1933 = vrot.lane.b32.xlu0 %v4463_v47, %s3479_s10 }
 0x223   : > { %1866 = vrot.lane.b32.xlu1 %v4461_v17, %s3480_s22  ;;  %1864 = vrot.lane.b32.xlu0 %v4463_v47, %s3480_s22 }
 0x227   : > { %1941 = vrot.lane.b32.xlu1 %v1799_v1, %s3479_s10  ;;  %1939 = vrot.lane.b32.xlu0 %v1798_v25, %s3479_s10 }
 0x22b   : > { %1872 = vrot.lane.b32.xlu1 %v1799_v1, %s3480_s22  ;;  %1870 = vrot.lane.b32.xlu0 %v1798_v25, %s3480_s22 }
 0x22f   : > { %1832 = vrot.lane.b32.xlu1 %v4485_v49, %s3480_s22  ;;  %1945 = vrot.lane.b32.xlu0 %v1801_v20, %s3479_s10 }
 0x233   : > { %1907 = vrot.lane.b32.xlu1 %v4490_v22, %s3479_s10  ;;  %1947 = vrot.lane.b32.xlu0 %v1802_v58, %s3479_s10 }
 0x237   : > { %1838 = vrot.lane.b32.xlu0 %v4490_v22, %s3480_s22  ;;  %1913 = vrot.lane.b32.xlu1 %v4495_v51, %s3479_s10 }
 0x23b   : > { %1844 = vrot.lane.b32.xlu0 %v4495_v51, %s3480_s22  ;;  %1919 = vrot.lane.b32.xlu1 %v4501_v60, %s3479_s10 }
 0x23f   : > { %1850 = vrot.lane.b32.xlu0 %v4501_v60, %s3480_s22  ;;  %1925 = vrot.lane.b32.xlu1 %v4507_v7, %s3479_s10 }
 0x243   : > { %1856 = vrot.lane.b32.xlu0 %v4507_v7, %s3480_s22  ;;  %1931 = vrot.lane.b32.xlu1 %v4513_v35, %s3479_s10 }
 0x247   : > { %1862 = vrot.lane.b32.xlu0 %v4513_v35, %s3480_s22  ;;  %1937 = vrot.lane.b32.xlu1 %v4519_v36, %s3479_s10 }
 0x24b   : > { %1868 = vrot.lane.b32.xlu0 %v4519_v36, %s3480_s22  ;;  %1943 = vrot.lane.b32.xlu1 %v1800_v62, %s3479_s10 }
 0x24f   : > { %1874 = vrot.lane.b32.xlu0 %v1800_v62, %s3480_s22  ;;  %1949 = vrot.lane.b32.xlu1 %v1803_v34, %s3479_s10 }
 0x265   : > { %v1904_v2 = vpop.permute.xlu1 %1903  ;;  %v1829_v54 = vpop.permute.xlu0 %1828 }
 0x266   : > { %v1975_v48 = vsel %vm457_vm0, %v1774_v15, %v1829_v54 }
 0x267   : > { %v4532_v46 = vsel %vm832_vm3, %v1975_v48, %v1904_v2 }
 0x268   : > { %3311 = vmatprep.mubr.msk.f32.mxu1 %vm872_vm4, %v4532_v46  ;;  %v2491_v43 = vrot.slane %v4532_v46, 2 }
 0x269   : > { %v1906_v19 = vpop.permute.xlu1 %1905  ;;  %v1831_v30 = vpop.permute.xlu0 %1830 }
 0x26a   : > { %v1976_v59 = vsel %vm457_vm0, %v1775_v50, %v1831_v30 }
 0x26b   : > { %v4538_v5 = vsel %vm832_vm3, %v1976_v59, %v1906_v19 }
 0x26c   : > { %3312 = vmatmul.mubr.msk.f32.vlgmr.msra.gmra.mxu1 %vm872_vm4, %v4538_v5  ;;  %v2492_v11 = vrot.slane %v4538_v5, 2 }
 0x26d   : > { %v1837_v18 = vpop.permute.xlu1 %1836  ;;  %v1835_v37 = vpop.permute.xlu0 %1834  ;;  %3336 = vmatpush3.msk.msra.mxu1 %vm933_vm2, %v4433_v32 }
 0x26e   : > { %v2493_v38 = vsel %vm1414_vm6, %v2491_v43, %v2492_v11  ;;  %3337 = vmatprep.subr.mxu1 %v3039_v42  ;;  %v1979_v6 = vsel %vm457_vm0, %v4388_v31, %v1837_v18  ;;  %v1978_v9 = vsel %vm457_vm0, %v4380_v41, %v1835_v37 }
 0x26f   : > { %3367 = vmatprep.mubr.msk.f32.mxu0 %vm872_vm4, %v2493_v38  ;;  %3338 = vmatpush3.msra.mxu1 %v3039_v42 }
 0x271   : > { %v1912_v55 = vpop.permute.xlu1 %1911  ;;  %v1910_v52 = vpop.permute.xlu0 %1909 }
 0x272   : > { %v4558_v44 = vsel %vm832_vm3, %v1979_v6, %v1912_v55  ;;  %v4561_v40 = vsel %vm832_vm3, %v1978_v9, %v1910_v52  ;;  %v1776_v6 = vld [vmem:[#allocation3 + $0x10] sm:$0x3]  ;;  %v2252_v55 = vrot.slane %v4532_v46, 1 }
 0x273   : > { %3314 = vmatprep.mubr.msk.f32.mxu1 %vm872_vm4, %v4561_v40  ;;  %v2258_v46 = vrot.slane %v4558_v44, 1 }
 0x274   : > { %3315 = vmatmul.mubr.msk.f32.gmra.mxu1 %vm872_vm4, %v4558_v44 }
 0x275   : > { %v1843_v56 = vpop.permute.xlu1 %1842  ;;  %v1841_v39 = vpop.permute.xlu0 %1840 }
 0x276   : > { %v1982_v21 = vsel %vm457_vm0, %v4386_v10, %v1843_v56  ;;  %v1981_v12 = vsel %vm457_vm0, %v4378_v27, %v1841_v39 }
 0x279   : > { %v1918_v29 = vpop.permute.xlu1 %1917  ;;  %v1916_v23 = vpop.permute.xlu0 %1915 }
 0x27a   : > { %v4572_v24 = vsel %vm832_vm3, %v1982_v21, %v1918_v29  ;;  %v4575_v14 = vsel %vm832_vm3, %v1981_v12, %v1916_v23  ;;  %v2497_v12 = vrot.slane %v4558_v44, 2  ;;  %v2496_v29 = vrot.slane %v4561_v40, 2 }
 0x27b   : > { %3317 = vmatprep.mubr.msk.f32.mxu1 %vm872_vm4, %v4575_v14  ;;  %v2262_v44 = vrot.slane %v4575_v14, 1 }
 0x27c   : > { %3318 = vmatmul.mubr.msk.f32.gmra.mxu1 %vm872_vm4, %v4572_v24 }
 0x27d   : > { %v1849_v3 = vpop.permute.xlu1 %1848  ;;  %v1847_v13 = vpop.permute.xlu0 %1846 }
 0x27e   : > { %v1985_v41 = vsel %vm457_vm0, %v4401_v63, %v1849_v3  ;;  %v1984_v27 = vsel %vm457_vm0, %v4403_v8, %v1847_v13  ;;  %v2257_v13 = vrot.slane %v4561_v40, 1 }
 0x281   : > { %v1924_v10 = vpop.permute.xlu1 %1923  ;;  %v1922_v31 = vpop.permute.xlu0 %1921 }
 0x282   : > { %v4586_v4 = vsel %vm832_vm3, %v1985_v41, %v1924_v10  ;;  %v4589_v53 = vsel %vm832_vm3, %v1984_v27, %v1922_v31 }
 0x283   : > { %3320 = vmatprep.mubr.msk.f32.mxu1 %vm872_vm4, %v4589_v53 }
 0x284   : > { %3321 = vmatmul.mubr.msk.f32.gmra.mxu1 %vm872_vm4, %v4586_v4 }
 0x285   : > { %v1855_v32 = vpop.permute.xlu1 %1854  ;;  %v1853_v1 = vpop.permute.xlu0 %1852 }
 0x286   : > { %v1988_v63 = vsel %vm457_vm0, %v4418_v57, %v1855_v32  ;;  %v1987_v8 = vsel %vm457_vm0, %v4420_v16, %v1853_v1  ;;  %v2263_v1 = vrot.slane %v4572_v24, 1 }
 0x289   : > { %v1930_v25 = vpop.permute.xlu1 %1929  ;;  %v1928_v28 = vpop.permute.xlu0 %1927 }
 0x28a   : > { %v4600_v26 = vsel %vm832_vm3, %v1988_v63, %v1930_v25  ;;  %v4603_v20 = vsel %vm832_vm3, %v1987_v8, %v1928_v28  ;;  %v2498_v63 = vsel %vm1414_vm6, %v2496_v29, %v2497_v12  ;;  %v2502_v8 = vrot.slane %v4572_v24, 2 }
 0x28b   : > { %3323 = vmatprep.mubr.msk.f32.mxu1 %vm872_vm4, %v4603_v20  ;;  %v2501_v25 = vrot.slane %v4575_v14, 2 }
 0x28c   : > { %3324 = vmatmul.mubr.msk.f32.gmra.mxu1 %vm872_vm4, %v4600_v26 }
 0x28d   : > { %v1861_v58 = vpop.permute.xlu1 %1860  ;;  %v1859_v62 = vpop.permute.xlu0 %1858 }
 0x28e   : > { %v1991_v57 = vsel %vm457_vm0, %v4435_v33, %v1861_v58  ;;  %v1990_v16 = vsel %vm457_vm0, %v4437_v45, %v1859_v62  ;;  %v2267_v62 = vrot.slane %v4589_v53, 1 }
 0x291   : > { %v1936_v34 = vpop.permute.xlu1 %1935  ;;  %v1934_v15 = vpop.permute.xlu0 %1933 }
 0x292   : > { %v4614_v2 = vsel %vm832_vm3, %v1991_v57, %v1936_v34  ;;  %v4617_v54 = vsel %vm832_vm3, %v1990_v16, %v1934_v15  ;;  %v2264_v15 = vsel %vm1132_vm5, %v2262_v44, %v2263_v1 }
 0x293   : > { %3326 = vmatprep.mubr.msk.f32.mxu1 %vm872_vm4, %v4617_v54 }
 0x294   : > { %3327 = vmatmul.mubr.msk.f32.gmra.mxu1 %vm872_vm4, %v4614_v2 }
 0x295   : > { %v1867_v48 = vpop.permute.xlu1 %1866  ;;  %v1865_v50 = vpop.permute.xlu0 %1864 }
 0x296   : > { %v1994_v33 = vsel %vm457_vm0, %v4449_v61, %v1867_v48  ;;  %v1993_v45 = vsel %vm457_vm0, %v4451_v0, %v1865_v50  ;;  %v2253_v61 = vrot.slane %v4538_v5, 1  ;;  %v2259_v5 = vsel %vm1132_vm5, %v2257_v13, %v2258_v46 }
 0x297   : > { %v2507_v48 = vrot.slane %v4586_v4, 2  ;;  %v2506_v50 = vrot.slane %v4589_v53, 2  ;;  %v2516_v13 = vrot.slane %v4617_v54, 2 }
 0x299   : > { %v1942_v19 = vpop.permute.xlu1 %1941  ;;  %v1940_v30 = vpop.permute.xlu0 %1939 }
 0x29a   : > { %v4628_v59 = vsel %vm832_vm3, %v1994_v33, %v1942_v19  ;;  %v4631_v42 = vsel %vm832_vm3, %v1993_v45, %v1940_v30  ;;  %v2503_v45 = vsel %vm1414_vm6, %v2501_v25, %v2502_v8  ;;  %v2273_v30 = vrot.slane %v4600_v26, 1 }
 0x29b   : > { %3329 = vmatprep.mubr.msk.f32.mxu1 %vm872_vm4, %v4631_v42 }
 0x29c   : > { %3330 = vmatmul.mubr.msk.f32.gmra.mxu1 %vm872_vm4, %v4628_v59 }
 0x29d   : > { %v1873_v43 = vpop.permute.xlu1 %1872  ;;  %v1871_v18 = vpop.permute.xlu0 %1870 }
 0x29e   : > { %v1996_v0 = vsel %vm457_vm0, %v4463_v47, %v1871_v18  ;;  %v1997_v52 = vsel %vm457_vm0, %v4461_v17, %v1873_v43  ;;  %v2254_v47 = vsel %vm1132_vm5, %v2252_v55, %v2253_v61  ;;  %v2272_v18 = vrot.slane %v4603_v20, 1 }
 0x2a1   : > { %v1833_v37 = vpop.permute.xlu1 %1832  ;;  %v1946_v38 = vpop.permute.xlu0 %1945 }
 0x2a2   : > { %v4641_v9 = vsel %vm832_vm3, %v1996_v0, %v1946_v38  ;;  %v1977_v56 = vsel %vm457_vm0, %v1776_v6, %v1833_v37  ;;  %v2512_v38 = vrot.slane %v4600_v26, 2  ;;  %v2511_v6 = vrot.slane %v4603_v20, 2 }
 0x2a3   : > { %3332 = vmatprep.mubr.msk.f32.mxu1 %vm872_vm4, %v4641_v9  ;;  %v2277_v26 = vrot.slane %v4617_v54, 1 }
 0x2a5   : > { %v1908_v39 = vpop.permute.xlu1 %1907  ;;  %v1948_v21 = vpop.permute.xlu0 %1947 }
 0x2a6   : > { %v2001_v23 = vsel %vm832_vm3, %v1977_v56, %v1908_v39  ;;  %v4654_v3 = vsel %vm832_vm3, %v1997_v52, %v1948_v21  ;;  %v2508_v52 = vsel %vm1414_vm6, %v2506_v50, %v2507_v48 }
 0x2a7   : > { %v2255_v17 = vrot.slane %v2001_v23, 1  ;;  %v2494_v41 = vrot.slane %v2001_v23, 2  ;;  %3333 = vmatmul.mubr.msk.f32.gmra.mxu1 %vm872_vm4, %v4654_v3  ;;  %v2274_v23 = vsel %vm1132_vm5, %v2272_v18, %v2273_v30 }
 0x2a8   : > { %3339 = vmatprep.mubr.msk.f32.mxu1 %vm872_vm4, %v2254_v47 }
 0x2a9   : > { %v2256_v27 = vsel %vm1132_vm5, %v2253_v61, %v2255_v17  ;;  %v1839_v10 = vpop.permute.xlu0 %1838  ;;  %v1914_v31 = vpop.permute.xlu1 %1913  ;;  %v2495_v32 = vsel %vm1414_vm6, %v2492_v11, %v2494_v41  ;;  %v2513_v41 = vsel %vm1414_vm6, %v2511_v6, %v2512_v38 }
 0x2aa   : > { %v1980_v40 = vsel %vm457_vm0, %v4485_v49, %v1839_v10  ;;  %3368 = vmatmul.mubr.msk.f32.vlgmr.msra.gmra.mxu0 %vm872_vm4, %v2495_v32  ;;  %v2268_v49 = vrot.slane %v4586_v4, 1  ;;  %v2283_v10 = vrot.slane %v4628_v59, 1  ;;  %v2282_v32 = vrot.slane %v4631_v42, 1 }
 0x2ab   : > { %v2004_v28 = vsel %vm832_vm3, %v1980_v40, %v1914_v31  ;;  %3340 = vmatmul.mubr.msk.f32.vlgmr.msra.gmra.mxu1 %vm872_vm4, %v2256_v27  ;;  %3370 = vmatprep.mubr.msk.f32.mxu0 %vm872_vm4, %v2498_v63  ;;  %v2522_v63 = vrot.slane %v4628_v59, 2 }
 0x2ac   : > { %v2260_v11 = vrot.slane %v2004_v28, 1  ;;  %v2499_v58 = vrot.slane %v2004_v28, 2  ;;  %3342 = vmatprep.mubr.msk.f32.mxu1 %vm872_vm4, %v2259_v5  ;;  %v2269_v53 = vsel %vm1132_vm5, %v2267_v62, %v2268_v49  ;;  %v2284_v62 = vsel %vm1132_vm5, %v2282_v32, %v2283_v10  ;;  %v2730_v32 = vld [vmem:[%s3643_s18] sm:$0xff] }
 0x2ad   : > { %v1845_v57 = vpop.permute.xlu0 %1844  ;;  %v1920_v24 = vpop.permute.xlu1 %1919 }
 0x2ae   : > { %v1983_v14 = vsel %vm457_vm0, %v4490_v22, %v1845_v57  ;;  %v2261_v16 = vsel %vm1132_vm5, %v2258_v46, %v2260_v11  ;;  %v2500_v34 = vsel %vm1414_vm6, %v2497_v12, %v2499_v58  ;;  %v2517_v46 = vrot.slane %v4614_v2, 2 }
 0x2af   : > { %v2007_v33 = vsel %vm832_vm3, %v1983_v14, %v1920_v24  ;;  %3343 = vmatmul.mubr.msk.f32.gmra.mxu1 %vm872_vm4, %v2261_v16  ;;  %3371 = vmatmul.mubr.msk.f32.gmra.mxu0 %vm872_vm4, %v2500_v34  ;;  %v2288_v57 = vrot.slane %v4654_v3, 1  ;;  %v2527_v24 = vrot.slane %v4654_v3, 2 }
 0x2b0   : > { %v2265_v19 = vrot.slane %v2007_v33, 1  ;;  %v2504_v22 = vrot.slane %v2007_v33, 2  ;;  %3345 = vmatprep.mubr.msk.f32.mxu1 %vm872_vm4, %v2264_v15  ;;  %3373 = vmatprep.mubr.msk.f32.mxu0 %vm872_vm4, %v2503_v45  ;;  %v2518_v28 = vsel %vm1414_vm6, %v2516_v13, %v2517_v46  ;;  %v2287_v15 = vrot.slane %v4641_v9, 1 }
 0x2b1   : > { %v1851_v43 = vpop.permute.xlu0 %1850  ;;  %v1926_v4 = vpop.permute.xlu1 %1925 }
 0x2b2   : > { %v1986_v61 = vsel %vm457_vm0, %v4495_v51, %v1851_v43  ;;  %v2266_v0 = vsel %vm1132_vm5, %v2263_v1, %v2265_v19  ;;  %v2505_v37 = vsel %vm1414_vm6, %v2502_v8, %v2504_v22  ;;  %v2278_v51 = vrot.slane %v4614_v2, 1 }
 0x2b3   : > { %v2010_v55 = vsel %vm832_vm3, %v1986_v61, %v1926_v4  ;;  %3346 = vmatmul.mubr.msk.f32.gmra.mxu1 %vm872_vm4, %v2266_v0  ;;  %3374 = vmatmul.mubr.msk.f32.gmra.mxu0 %vm872_vm4, %v2505_v37  ;;  %v2521_v8 = vrot.slane %v4631_v42, 2 }
 0x2b4   : > { %v2270_v56 = vrot.slane %v2010_v55, 1  ;;  %v2509_v39 = vrot.slane %v2010_v55, 2  ;;  %3348 = vmatprep.mubr.msk.f32.mxu1 %vm872_vm4, %v2269_v53  ;;  %3376 = vmatprep.mubr.msk.f32.mxu0 %vm872_vm4, %v2508_v52  ;;  %v2279_v54 = vsel %vm1132_vm5, %v2277_v26, %v2278_v51 }
 0x2b5   : > { %v1857_v21 = vpop.permute.xlu0 %1856  ;;  %v1932_v20 = vpop.permute.xlu1 %1931  ;;  %v2523_v16 = vsel %vm1414_vm6, %v2521_v8, %v2522_v63 }
 0x2b6   : > { %v1989_v47 = vsel %vm457_vm0, %v4501_v60, %v1857_v21  ;;  %v2271_v12 = vsel %vm1132_vm5, %v2268_v49, %v2270_v56  ;;  %v2510_v29 = vsel %vm1414_vm6, %v2507_v48, %v2509_v39  ;;  %v2526_v48 = vrot.slane %v4641_v9, 2 }
 0x2b7   : > { %v2013_v17 = vsel %vm832_vm3, %v1989_v47, %v1932_v20  ;;  %3349 = vmatmul.mubr.msk.f32.gmra.mxu1 %vm872_vm4, %v2271_v12  ;;  %3377 = vmatmul.mubr.msk.f32.gmra.mxu0 %vm872_vm4, %v2510_v29  ;;  %v4781_v47 = vld [vmem:[%s4879_s6] ss:$0 sm:$0xff] }
 0x2b8   : > { %v2275_v27 = vrot.slane %v2013_v17, 1  ;;  %v2514_v60 = vrot.slane %v2013_v17, 2  ;;  %3351 = vmatprep.mubr.msk.f32.mxu1 %vm872_vm4, %v2274_v23  ;;  %3379 = vmatprep.mubr.msk.f32.mxu0 %vm872_vm4, %v2513_v41  ;;  %v2528_v43 = vsel %vm1414_vm6, %v2526_v48, %v2527_v24 }
 0x2b9   : > { %v1863_v31 = vpop.permute.xlu0 %1862  ;;  %v1938_v2 = vpop.permute.xlu1 %1937 }
 0x2ba   : > { %v1992_v1 = vsel %vm457_vm0, %v4507_v7, %v1863_v31  ;;  %v2276_v44 = vsel %vm1132_vm5, %v2273_v30, %v2275_v27  ;;  %v2515_v40 = vsel %vm1414_vm6, %v2512_v38, %v2514_v60  ;;  %v2289_v30 = vsel %vm1132_vm5, %v2287_v15, %v2288_v57  ;;  %v2731_v60 = vld [vmem:[%s3643_s18 + $0x8] sm:$0xff] }
 0x2bb   : > { %v2016_v25 = vsel %vm832_vm3, %v1992_v1, %v1938_v2  ;;  %3352 = vmatmul.mubr.msk.f32.gmra.mxu1 %vm872_vm4, %v2276_v44  ;;  %3380 = vmatmul.mubr.msk.f32.gmra.mxu0 %vm872_vm4, %v2515_v40 }
 0x2bc   : > { %v2280_v5 = vrot.slane %v2016_v25, 1  ;;  %v2519_v11 = vrot.slane %v2016_v25, 2  ;;  %3354 = vmatprep.mubr.msk.f32.mxu1 %vm872_vm4, %v2279_v54  ;;  %3382 = vmatprep.mubr.msk.f32.mxu0 %vm872_vm4, %v2518_v28  ;;  %v2733_v28 = vld [vmem:[%s3643_s18 + $0x18] sm:$0xff] }
 0x2bd   : > { %v1869_v7 = vpop.permute.xlu0 %1868  ;;  %v1944_v58 = vpop.permute.xlu1 %1943 }
 0x2be   : > { %v1995_v59 = vsel %vm457_vm0, %v4513_v35, %v1869_v7  ;;  %v2281_v42 = vsel %vm1132_vm5, %v2278_v51, %v2280_v5  ;;  %v2520_v49 = vsel %vm1414_vm6, %v2517_v46, %v2519_v11 }
 0x2bf   : > { %v2019_v14 = vsel %vm832_vm3, %v1995_v59, %v1944_v58  ;;  %3355 = vmatmul.mubr.msk.f32.gmra.mxu1 %vm872_vm4, %v2281_v42  ;;  %3383 = vmatmul.mubr.msk.f32.gmra.mxu0 %vm872_vm4, %v2520_v49  ;;  %v2732_v49 = vld [vmem:[%s3643_s18 + $0x10] sm:$0xff] }
 0x2c0   : > { %v2285_v34 = vrot.slane %v2019_v14, 1  ;;  %v2524_v35 = vrot.slane %v2019_v14, 2  ;;  %3357 = vmatprep.mubr.msk.f32.mxu1 %vm872_vm4, %v2284_v62  ;;  %3385 = vmatprep.mubr.msk.f32.mxu0 %vm872_vm4, %v2523_v16 }
 0x2c1   : > { %v1875_v50 = vpop.permute.xlu0 %1874  ;;  %v1950_v3 = vpop.permute.xlu1 %1949 }
 0x2c2   : > { %v1998_v33 = vsel %vm457_vm0, %v4519_v36, %v1875_v50  ;;  %v2286_v45 = vsel %vm1132_vm5, %v2283_v10, %v2285_v34  ;;  %v2525_v19 = vsel %vm1414_vm6, %v2522_v63, %v2524_v35  ;;  %v2735_v35 = vld [vmem:[%s3643_s18 + $0x28] sm:$0xff] }
 0x2c3   : > { %v2022_v22 = vsel %vm832_vm3, %v1998_v33, %v1950_v3  ;;  %3358 = vmatmul.mubr.msk.f32.gmra.mxu1 %vm872_vm4, %v2286_v45  ;;  %3386 = vmatmul.mubr.msk.f32.gmra.mxu0 %vm872_vm4, %v2525_v19  ;;  %v2734_v19 = vld [vmem:[%s3643_s18 + $0x20] sm:$0xff] }
 0x2c4   : > { %v2290_v9 = vrot.slane %v2022_v22, 1  ;;  %v2529_v4 = vrot.slane %v2022_v22, 2  ;;  %3360 = vmatprep.mubr.msk.f32.mxu1 %vm872_vm4, %v2289_v30  ;;  %3388 = vmatprep.mubr.msk.f32.mxu0 %vm872_vm4, %v2528_v43 }
 0x2c6   : > { %v2291_v36 = vsel %vm1132_vm5, %v2288_v57, %v2290_v9  ;;  %v2530_v53 = vsel %vm1414_vm6, %v2527_v24, %v2529_v4 }
 0x2c7   : > { %3361 = vmatmul.mubr.msk.f32.gmra.mxu1 %vm872_vm4, %v2291_v36  ;;  %3389 = vmatmul.mubr.msk.f32.gmra.mxu0 %vm872_vm4, %v2530_v53  ;;  %v2737_v53 = vld [vmem:[%s3643_s18 + $0x38] sm:$0xff] }
 0x32c   : > { %v3313_v18 = vpop.f32.mrf.mxu1 }
 0x32d   : > { %v2229_v23 = vadd.f32 %v3313_v18, %v4781_v47 }
 0x32e   : > { %v2149_v61 = vpop.f32.mrf.mxu1 }
 0x32f   : > { %v2228_v17 = vadd.f32 %v4781_v47, %v2149_v61 }
 0x334   : > { %v3316_v0 = vpop.f32.mrf.mxu1 }
 0x335   : > { %v2231_v31 = vadd.f32 %v3316_v0, %v4781_v47 }
 0x336   : > { %v2159_v37 = vpop.f32.mrf.mxu1 }
 0x337   : > { %v2230_v40 = vadd.f32 %v4781_v47, %v2159_v37 }
 0x33c   : > { %v3319_v38 = vpop.f32.mrf.mxu1 }
 0x33d   : > { %v2233_v7 = vadd.f32 %v3319_v38, %v4781_v47 }
 0x33e   : > { %v2169_v6 = vpop.f32.mrf.mxu1 }
 0x33f   : > { %v2232_v24 = vadd.f32 %v4781_v47, %v2169_v6 }
 0x344   : > { %v3322_v55 = vpop.f32.mrf.mxu1 }
 0x345   : > { %v2235_v50 = vadd.f32 %v3322_v55, %v4781_v47  ;;  %v2736_v55 = vld [vmem:[%s3643_s18 + $0x30] sm:$0xff] }
 0x346   : > { %v2179_v52 = vpop.f32.mrf.mxu1 }
 0x347   : > { %v2234_v43 = vadd.f32 %v4781_v47, %v2179_v52 }
 0x34c   : > { %v3325_v56 = vpop.f32.mrf.mxu1 }
 0x34d   : > { %v2237_v0 = vadd.f32 %v3325_v56, %v4781_v47  ;;  %v2739_v56 = vld [vmem:[%s3643_s18 + $0x48] sm:$0xff] }
 0x34e   : > { %v4768_v39 = vpop.f32.mrf.mxu1 }
 0x354   : > { %v4770_v51 = vpop.f32.mrf.mxu1 }
 0x356   : > { %v4772_v26 = vpop.f32.mrf.mxu1 }
 0x35c   : > { %v4774_v21 = vpop.f32.mrf.mxu1 }
 0x35e   : > { %v4776_v20 = vpop.f32.mrf.mxu1 }
 0x367   : > { %v4783_v12 = vpop.f32.mrf.mxu1 }
 0x369   : > { %v4785_v29 = vpop.f32.mrf.mxu1 }
 0x36a   : > { %v3369_v46 = vpop.f32.mrf.mxu0 }
 0x36b   : > { %v3341_v13 = vpop.f32.mrf.mxu1 }
 0x36c   : > { %v2476_v41 = vadd.f32 %v3341_v13, %v2229_v23  ;;  %v2635_v27 = vpop.f32.mrf.mxu0 }
 0x36d   : > { %v2396_v10 = vpop.f32.mrf.mxu1 }
 0x36e   : > { %v2715_v2 = vadd.f32 %v3369_v46, %v2476_v41  ;;  %v2475_v54 = vadd.f32 %v2396_v10, %v2228_v17  ;;  %v2236_v46 = vadd.f32 %v4781_v47, %v4768_v39  ;;  %v2239_v10 = vadd.f32 %v4770_v51, %v4781_v47  ;;  %v2738_v39 = vld [vmem:[%s3643_s18 + $0x40] sm:$0xff]  ;;  %v2741_v51 = vld [vmem:[%s3643_s18 + $0x58] sm:$0xff] }
 0x36f   : > { %v3344_v1 = vpop.f32.mrf.mxu1  ;;  %v3372_v44 = vpop.f32.mrf.mxu0 }
 0x370   : > { %v2747_v63 = vadd.f32 %v2731_v60, %v2715_v2  ;;  %v2714_v8 = vadd.f32 %v2635_v27, %v2475_v54  ;;  %v2478_v25 = vadd.f32 %v3344_v1, %v2231_v31 }
 0x371   : > { %v2406_v5 = vpop.f32.mrf.mxu1  ;;  %v2645_v11 = vpop.f32.mrf.mxu0 }
 0x372   : > { %2763 = vst.msk [vmem:[%s3648_s21 + $0x8] sm:$0xff] %vm457_vm0, %v2747_v63  ;;  %v2746_v58 = vadd.f32 %v2730_v32, %v2714_v8  ;;  %v2717_v59 = vadd.f32 %v3372_v44, %v2478_v25  ;;  %v2477_v42 = vadd.f32 %v2406_v5, %v2230_v40  ;;  %v2238_v44 = vadd.f32 %v4781_v47, %v4772_v26  ;;  %v2740_v26 = vld [vmem:[%s3643_s18 + $0x50] sm:$0xff] }
 0x373   : > { %v3347_v62 = vpop.f32.mrf.mxu1  ;;  %v3375_v57 = vpop.f32.mrf.mxu0  ;;  %v2241_v5 = vadd.f32 %v4774_v21, %v4781_v47  ;;  %v2743_v21 = vld [vmem:[%s3643_s18 + $0x68] sm:$0xff] }
 0x374   : > { %2762 = vst.msk [vmem:[%s3648_s21] sm:$0xff] %vm457_vm0, %v2746_v58  ;;  %v2749_v14 = vadd.f32 %v2733_v28, %v2717_v59  ;;  %v2716_v16 = vadd.f32 %v2645_v11, %v2477_v42  ;;  %v2480_v34 = vadd.f32 %v3347_v62, %v2233_v7 }
 0x375   : > { %v2416_v15 = vpop.f32.mrf.mxu1  ;;  %v2655_v48 = vpop.f32.mrf.mxu0 }
 0x376   : > { %2765 = vst.msk [vmem:[%s3648_s21 + $0x18] sm:$0xff] %vm457_vm0, %v2749_v14  ;;  %v2748_v3 = vadd.f32 %v2732_v49, %v2716_v16  ;;  %v2719_v33 = vadd.f32 %v3375_v57, %v2480_v34  ;;  %v2479_v45 = vadd.f32 %v2416_v15, %v2232_v24  ;;  %v2240_v49 = vadd.f32 %v4781_v47, %v4776_v20  ;;  %v2742_v20 = vld [vmem:[%s3643_s18 + $0x60] sm:$0xff] }
 0x377   : > { %v3350_v22 = vpop.f32.mrf.mxu1  ;;  %v3378_v30 = vpop.f32.mrf.mxu0  ;;  %v2243_v34 = vadd.f32 %v4783_v12, %v4781_v47 }
 0x378   : > { %2764 = vst.msk [vmem:[%s3648_s21 + $0x10] sm:$0xff] %vm457_vm0, %v2748_v3  ;;  %v2751_v9 = vadd.f32 %v2735_v35, %v2719_v33  ;;  %v2718_v4 = vadd.f32 %v2655_v48, %v2479_v45  ;;  %v2482_v36 = vadd.f32 %v3350_v22, %v2235_v50  ;;  %v2242_v33 = vadd.f32 %v4781_v47, %v4785_v29  ;;  %v2745_v22 = vld [vmem:[%s3643_s18 + $0x78] sm:$0xff] }
 0x379   : > { %v2426_v18 = vpop.f32.mrf.mxu1  ;;  %v2665_v61 = vpop.f32.mrf.mxu0 }
 0x37a   : > { %2767 = vst.msk [vmem:[%s3648_s21 + $0x28] sm:$0xff] %vm457_vm0, %v2751_v9  ;;  %v2750_v37 = vadd.f32 %v2734_v19, %v2718_v4  ;;  %v2721_v38 = vadd.f32 %v3378_v30, %v2482_v36  ;;  %v2481_v6 = vadd.f32 %v2426_v18, %v2234_v43 }
 0x37b   : > { %v3353_v52 = vpop.f32.mrf.mxu1  ;;  %v3381_v23 = vpop.f32.mrf.mxu0 }
 0x37c   : > { %2766 = vst.msk [vmem:[%s3648_s21 + $0x20] sm:$0xff] %vm457_vm0, %v2750_v37  ;;  %v2753_v13 = vadd.f32 %v2737_v53, %v2721_v38  ;;  %v2720_v17 = vadd.f32 %v2665_v61, %v2481_v6  ;;  %v2484_v41 = vadd.f32 %v3353_v52, %v2237_v0  ;;  %v2744_v53 = vld [vmem:[%s3643_s18 + $0x70] sm:$0xff] }
 0x37d   : > { %v2436_v27 = vpop.f32.mrf.mxu1  ;;  %v2675_v60 = vpop.f32.mrf.mxu0 }
 0x37e   : > { %2769 = vst.msk [vmem:[%s3648_s21 + $0x38] sm:$0xff] %vm457_vm0, %v2753_v13  ;;  %v2752_v31 = vadd.f32 %v2736_v55, %v2720_v17  ;;  %v2723_v2 = vadd.f32 %v3381_v23, %v2484_v41  ;;  %v2483_v54 = vadd.f32 %v2436_v27, %v2236_v46 }
 0x37f   : > { %v3356_v32 = vpop.f32.mrf.mxu1  ;;  %v3384_v1 = vpop.f32.mrf.mxu0 }
 0x380   : > { %2768 = vst.msk [vmem:[%s3648_s21 + $0x30] sm:$0xff] %vm457_vm0, %v2752_v31  ;;  %v2755_v40 = vadd.f32 %v2739_v56, %v2723_v2  ;;  %v2722_v63 = vadd.f32 %v2675_v60, %v2483_v54  ;;  %v2486_v8 = vadd.f32 %v3356_v32, %v2239_v10 }
 0x381   : > { %v2446_v25 = vpop.f32.mrf.mxu1  ;;  %v2685_v28 = vpop.f32.mrf.mxu0 }
 0x382   : > { %2771 = vst.msk [vmem:[%s3648_s21 + $0x48] sm:$0xff] %vm457_vm0, %v2755_v40  ;;  %v2754_v11 = vadd.f32 %v2738_v39, %v2722_v63  ;;  %v2725_v7 = vadd.f32 %v3384_v1, %v2486_v8  ;;  %v2485_v58 = vadd.f32 %v2446_v25, %v2238_v44 }
 0x383   : > { %v3359_v59 = vpop.f32.mrf.mxu1  ;;  %v3387_v42 = vpop.f32.mrf.mxu0 }
 0x384   : > { %2770 = vst.msk [vmem:[%s3648_s21 + $0x40] sm:$0xff] %vm457_vm0, %v2754_v11  ;;  %v2757_v62 = vadd.f32 %v2741_v51, %v2725_v7  ;;  %v2724_v57 = vadd.f32 %v2685_v28, %v2485_v58  ;;  %v2488_v24 = vadd.f32 %v3359_v59, %v2241_v5 }
 0x385   : > { %v2456_v14 = vpop.f32.mrf.mxu1  ;;  %v2695_v16 = vpop.f32.mrf.mxu0 }
 0x386   : > { %2773 = vst.msk [vmem:[%s3648_s21 + $0x58] sm:$0xff] %vm457_vm0, %v2757_v62  ;;  %v2756_v35 = vadd.f32 %v2740_v26, %v2724_v57  ;;  %v2727_v15 = vadd.f32 %v3387_v42, %v2488_v24  ;;  %v2487_v48 = vadd.f32 %v2456_v14, %v2240_v49 }
 0x387   : > { %v3362_v50 = vpop.f32.mrf.mxu1  ;;  %v3390_v3 = vpop.f32.mrf.mxu0 }
 0x388   : > { %2772 = vst.msk [vmem:[%s3648_s21 + $0x50] sm:$0xff] %vm457_vm0, %v2756_v35  ;;  %v2759_v45 = vadd.f32 %v2743_v21, %v2727_v15  ;;  %v2726_v19 = vadd.f32 %v2695_v16, %v2487_v48  ;;  %v2490_v12 = vadd.f32 %v3362_v50, %v2243_v34 }
 0x389   : > { %v2466_v30 = vpop.f32.mrf.mxu1  ;;  %v2705_v36 = vpop.f32.mrf.mxu0 }
 0x38a   : > { %2775 = vst.msk [vmem:[%s3648_s21 + $0x68] sm:$0xff] %vm457_vm0, %v2759_v45  ;;  %v2758_v43 = vadd.f32 %v2742_v20, %v2726_v19  ;;  %v2729_v9 = vadd.f32 %v3390_v3, %v2490_v12  ;;  %v2489_v4 = vadd.f32 %v2466_v30, %v2242_v33 }
 0x38c   : > { %2774 = vst.msk [vmem:[%s3648_s21 + $0x60] sm:$0xff] %vm457_vm0, %v2758_v43  ;;  %v2761_v18 = vadd.f32 %v2745_v22, %v2729_v9  ;;  %v2728_v47 = vadd.f32 %v2705_v36, %v2489_v4 }
 0x38e   : > { %2777 = vst.msk [vmem:[%s3648_s21 + $0x78] sm:$0xff] %vm457_vm0, %v2761_v18  ;;  %v2760_v29 = vadd.f32 %v2744_v53, %v2728_v47 }
 0x390   : > { %2776 = vst.msk [vmem:[%s3648_s21 + $0x70] sm:$0xff] %vm457_vm0, %v2760_v29 }
 0x391 PF: > { %s17_s28 = sadd.s32 1, %s3476_s28   ;;  %s4882_s24 = smov %s3468_s26 }
 0x392   : > { %p14_p13 = scmp.ge.s32.totalorder %s17_s28, 6   ;;  %s4883_s25 = smov %s3472_s27 }
 0x393   : > { %s4884_s26 = smov %s4887_s29  ;;  %s4885_s27 = smov %s4891_s30 }
 0x394   :  { %16 = sbr.rel (!%p14_p13) target bundleno = 3 (0x3), region = 108 }

</bundles_post_ra>
